<compile_context>
chip_gen: v7x
topology: tpu7x:2x2x1
jax: 0.10.0
libtpu: 0.0.40
codegen_flags: <defaults>
</compile_context>

<pallas_src>
import functools

import jax
import jax.numpy as jnp
from jax.experimental import pallas as pl
from jax.experimental.pallas import tpu as pltpu

_VMEM_LIMIT = 48 * 1024 * 1024        # sized against v7x's 64 MiB physical VMEM
_V_RESIDENT_BYTES = 8 * 1024 * 1024   # keep V resident if one copy fits this


def _round_up(x, m):
    return (x + m - 1) // m * m


def _pick_tiles(n):
    """Pick (n_pad, tm, tk): big tiles for big graphs, bounded padding waste,
    and >= 2 row tiles when possible (v7x has 2 TensorCores sharing the
    'parallel' grid axis)."""
    if n >= 1024:
        tk = 512
    elif n >= 256:
        tk = 256
    else:
        tk = 128
    n_pad = _round_up(n, tk)
    tm = tk
    while tm > 128 and (n_pad // tm) < 2:
        tm //= 2
    return n_pad, tm, tk


# -----------------------------------------------------------------------------
# Kernel 1: row-tiled dense matmul  out = X @ W   (F_in fully resident)
# -----------------------------------------------------------------------------
def _matmul_kernel(x_ref, w_ref, o_ref):
    o_ref[...] = jnp.dot(x_ref[...], w_ref[...],
                         preferred_element_type=jnp.float32).astype(o_ref.dtype)


def _matmul(x, w, *, tm):
    n, k = x.shape
    h = w.shape[1]
    # TODO(synk): add a K grid axis here if F_in grows to tens of thousands.
    return pl.pallas_call(
        _matmul_kernel,
        out_shape=jax.ShapeDtypeStruct((n, h), jnp.bfloat16),
        grid_spec=pltpu.PrefetchScalarGridSpec(
            num_scalar_prefetch=0,
            grid=(n // tm,),
            in_specs=[pl.BlockSpec((tm, k), lambda i: (i, 0)),
                      pl.BlockSpec((k, h), lambda i: (0, 0))],
            out_specs=pl.BlockSpec((tm, h), lambda i: (i, 0))),
        compiler_params=pltpu.CompilerParams(
            dimension_semantics=("parallel",),
            vmem_limit_bytes=_VMEM_LIMIT),
    )(x, w)


# -----------------------------------------------------------------------------
# Kernels 2/3: one GCNConv layer fused with the next dense matmul.
#   acc = sum_k A_hat_tile(i,k) @ V_tile(k)     (K-reduction, f32 VMEM scratch)
#   h   = acc + b            [+ relu]
#   out = h @ W_next + b_next
# If v_resident, V lives whole in VMEM (constant index_map) and is sliced with
# pl.ds inside the kernel, so only the A_hat stream hits HBM per row tile.
# -----------------------------------------------------------------------------
def _conv_fused_kernel(a_ref, v_ref, b_ref, wn_ref, bn_ref, o_ref, acc_ref, *,
                       relu, tk, v_resident):
    k = pl.program_id(1)

    @pl.when(k == 0)
    def _():
        acc_ref[...] = jnp.zeros_like(acc_ref)

    if v_resident:
        start = pl.multiple_of(k * tk, tk)
        v = v_ref[pl.ds(start, tk), :]
    else:
        v = v_ref[...]
    acc_ref[...] += jnp.dot(a_ref[...], v, preferred_element_type=jnp.float32)

    @pl.when(k == pl.num_programs(1) - 1)
    def _():
        h = acc_ref[...] + b_ref[...]
        if relu:
            h = jnp.maximum(h, 0.0)
        o = jnp.dot(h.astype(wn_ref.dtype), wn_ref[...],
                    preferred_element_type=jnp.float32) + bn_ref[...]
        o_ref[...] = o.astype(o_ref.dtype)


def _conv_fused(a, v, b, w_next, b_next, *, relu, out_dtype, tm, tk,
                v_resident):
    n = a.shape[0]
    h = v.shape[1]
    h_out = w_next.shape[1]
    if v_resident:
        v_spec = pl.BlockSpec((n, h), lambda i, k: (0, 0))      # resident in VMEM
    else:
        v_spec = pl.BlockSpec((tk, h), lambda i, k: (k, 0))     # streamed per k
    kernel = functools.partial(_conv_fused_kernel, relu=relu, tk=tk,
                               v_resident=v_resident)
    return pl.pallas_call(
        kernel,
        out_shape=jax.ShapeDtypeStruct((n, h_out), out_dtype),
        grid_spec=pltpu.PrefetchScalarGridSpec(
            num_scalar_prefetch=0,
            grid=(n // tm, n // tk),
            in_specs=[pl.BlockSpec((tm, tk), lambda i, k: (i, k)),    # A_hat tile
                      v_spec,                                         # V
                      pl.BlockSpec((1, h), lambda i, k: (0, 0)),      # bias
                      pl.BlockSpec((h, h_out), lambda i, k: (0, 0)),  # W_next
                      pl.BlockSpec((1, h_out), lambda i, k: (0, 0))], # b_next
            out_specs=pl.BlockSpec((tm, h_out), lambda i, k: (i, 0)),
            scratch_shapes=[pltpu.VMEM((tm, h), jnp.float32)]),
        compiler_params=pltpu.CompilerParams(
            dimension_semantics=("parallel", "arbitrary"),
            vmem_limit_bytes=_VMEM_LIMIT),
    )(a, v, b, w_next, b_next)


# -----------------------------------------------------------------------------
# Forward
# -----------------------------------------------------------------------------
def gcn_forward(x, edge_index, params, *, tm=None, tk=None):
    """x: [N, F_in] float32, edge_index: [2, E] int32 (undirected, no dups)."""
    n, _ = x.shape
    w1, b1 = params["w1"], params["b1"]
    w2, b2 = params["w2"], params["b2"]
    wl, bl = params["wl"], params["bl"]
    hid = w1.shape[1]
    c2 = w2.shape[1]
    out_dim = wl.shape[0]
    # TODO(synk): the original module only type-checks when output_dim == hidden_dim.
    assert wl.shape[1] == c2, (
        "GCN.forward requires output_dim == hidden_dim (lin applied to conv2 output)")

    n_pad, tm_def, tk_def = _pick_tiles(n)
    tm = tm_def if tm is None else tm
    tk = tk_def if tk is None else tk
    n_pad = _round_up(n_pad, max(tm, tk))
    assert n_pad % tm == 0 and n_pad % tk == 0, "tiles must divide padded N"

    # ---- glue: normalized adjacency built directly in bf16 (single scatter) --
    src = edge_index[0].astype(jnp.int32)
    dst = edge_index[1].astype(jnp.int32)
    diag = jnp.arange(n_pad, dtype=jnp.int32)
    rows = jnp.concatenate([dst, diag])          # self loops via the same scatter
    cols = jnp.concatenate([src, diag])
    deg = jnp.zeros((n_pad,), jnp.float32).at[rows].add(1.0)   # row sums of A+I
    d = jax.lax.rsqrt(deg)                                      # deg >= 1 always
    vals = (d[rows] * d[cols]).astype(jnp.bfloat16)
    a_hat = jnp.zeros((n_pad, n_pad), jnp.bfloat16).at[rows, cols].set(vals)

    # padded nodes only touch themselves (self loop); sliced off at the end.
    x_p = jnp.pad(x.astype(jnp.bfloat16), ((0, n_pad - n), (0, 0)))

    w1b = w1.astype(jnp.bfloat16)
    w2b = w2.astype(jnp.bfloat16)
    wlt = wl.T.astype(jnp.bfloat16)              # nn.Linear: y = x @ W^T + b
    b1r = b1.reshape(1, -1).astype(jnp.float32)
    b2r = b2.reshape(1, -1).astype(jnp.float32)
    blr = bl.reshape(1, -1).astype(jnp.float32)
    zero_b = jnp.zeros((1, c2), jnp.float32)

    # Hold V resident in VMEM when it comfortably fits even v7x's budget.
    v_resident = (n_pad * max(hid, c2) * 2) <= _V_RESIDENT_BYTES

    # 1) xw1 = X @ W1
    xw1 = _matmul(x_p, w1b, tm=tm)
    # 2) h2 = relu(A_hat @ xw1 + b1) @ W2
    h2 = _conv_fused(a_hat, xw1, b1r, w2b, zero_b, relu=True,
                     out_dtype=jnp.bfloat16, tm=tm, tk=tk, v_resident=v_resident)
    # 3) out = (A_hat @ h2 + b2) @ WL^T + bL
    out = _conv_fused(a_hat, h2, b2r, wlt, blr, relu=False,
                      out_dtype=jnp.float32, tm=tm, tk=tk, v_resident=v_resident)
    return out[:n, :out_dim]


def init_params(key, input_dim, hidden_dim, output_dim):
    k1, k2, k3 = jax.random.split(key, 3)

    def glorot(k, shape):
        lim = jnp.sqrt(6.0 / (shape[0] + shape[1]))
        return jax.random.uniform(k, shape, jnp.float32, -lim, lim)

    return {
        "w1": glorot(k1, (input_dim, hidden_dim)),
        "b1": jnp.zeros((hidden_dim,), jnp.float32),
        "w2": glorot(k2, (hidden_dim, output_dim)),
        "b2": jnp.zeros((output_dim,), jnp.float32),
        # nn.Linear(hidden_dim, output_dim): weight [out, in], bias [out]
        "wl": glorot(k3, (output_dim, hidden_dim)),
        "bl": jnp.zeros((output_dim,), jnp.float32),
    }


def _reference_forward(x, edge_index, params):
    """Pure-JAX f32 reference (same GCNConv semantics) for a sanity check."""
    n = x.shape[0]
    src, dst = edge_index[0], edge_index[1]
    a = jnp.zeros((n, n), jnp.float32).at[dst, src].set(1.0)
    a = a + jnp.eye(n, dtype=jnp.float32)
    d = jax.lax.rsqrt(a.sum(axis=1))
    a_hat = a * d[:, None] * d[None, :]
    h1 = jnp.maximum(a_hat @ (x @ params["w1"]) + params["b1"], 0.0)
    h2 = a_hat @ (h1 @ params["w2"]) + params["b2"]
    return h2 @ params["wl"].T + params["bl"]


if __name__ == "__main__":
    N = 200            # number of graph nodes (padded to 256 internally)
    input_dim = 192    # per-node input features
    hidden_dim = 128   # multiple of 128 -> lane-dense, unmasked stores
    output_dim = 128   # must equal hidden_dim (see TODO above)

    key = jax.random.PRNGKey(0)
    kx, kp = jax.random.split(key)
    x = jax.random.normal(kx, (N, input_dim), jnp.float32)

    # deterministic undirected ring graph: edges i <-> (i+1) mod N
    fwd = jnp.stack([jnp.arange(N), (jnp.arange(N) + 1) % N])
    edge_index = jnp.concatenate([fwd, fwd[::-1]], axis=1).astype(jnp.int32)

    params = init_params(kp, input_dim, hidden_dim, output_dim)

    out = jax.jit(gcn_forward)(x, edge_index, params)
    jax.block_until_ready(out)
    assert out.shape == (N, output_dim)

    # loose tolerance: kernel path runs A_hat / activations in bf16
    ref = _reference_forward(x, edge_index, params)
    err = jnp.max(jnp.abs(out - ref))
    scale = jnp.max(jnp.abs(ref))
    assert float(err) <= 0.1 * float(scale) + 0.1, (float(err), float(scale))

    print("KERNEL_OK")
</pallas_src>

<mosaic_0001>
module attributes {stable_mosaic.version = 11 : i64} {
  func.func private @main(%arg0: i32) attributes {dimension_semantics = [#tpu.dimension_semantics<core_parallel>], iteration_bounds = array<i64: 2>, tpu.core_type = #tpu.core_type<sc_scalar_subcore>, window_params = []} {
    return
  }
}

module attributes {stable_mosaic.version = 11 : i64} {
  func.func private @main(%arg0: i32) attributes {dimension_semantics = [#tpu.dimension_semantics<core_parallel>], iteration_bounds = array<i64: 2>, tpu.core_type = #tpu.core_type<sc_scalar_subcore>, window_params = []} {
    return
  }
}

module attributes {stable_mosaic.version = 11 : i64} {
  func.func @_matmul_kernel(%arg0: i32, %arg1: memref<128x192xbf16, #tpu.memory_space<vmem>>, %arg2: memref<192x128xbf16, #tpu.memory_space<vmem>>, %arg3: memref<128x128xbf16, #tpu.memory_space<vmem>>) attributes {dimension_semantics = [#tpu.dimension_semantics<parallel>], iteration_bounds = array<i64: 2>, scalar_prefetch = 0 : i64, scratch_operands = 0 : i64, tpu.core_type = #tpu.core_type<tc>, window_params = [{transform_indices = @transform_0, window_bounds = array<i64: 128, 192>}, {pipeline_mode = #tpu.pipeline_mode<synchronous>, transform_indices = @transform_1, window_bounds = array<i64: 192, 128>}, {transform_indices = @transform_2, window_bounds = array<i64: 128, 128>}]} {
    %c0 = arith.constant 0 : index
    %c0_0 = arith.constant 0 : index
    %0 = vector.load %arg1[%c0, %c0_0] : memref<128x192xbf16, #tpu.memory_space<vmem>>, vector<128x192xbf16>
    %c0_1 = arith.constant 0 : index
    %c0_2 = arith.constant 0 : index
    %1 = vector.load %arg2[%c0_1, %c0_2] : memref<192x128xbf16, #tpu.memory_space<vmem>>, vector<192x128xbf16>
    %cst = arith.constant dense<0.000000e+00> : vector<128x128xf32>
    %2 = tpu.matmul %0, %1, %cst {dimension_numbers = #tpu.dot_dimension_numbers<[1], [0], [0], [1], [0, 0, 1, 1], [], []>} : vector<128x192xbf16>, vector<192x128xbf16>, vector<128x128xf32> -> vector<128x128xf32>
    %3 = arith.truncf %2 : vector<128x128xf32> to vector<128x128xbf16>
    %c0_3 = arith.constant 0 : index
    %c0_4 = arith.constant 0 : index
    %4 = vector.load %arg3[%c0_3, %c0_4] : memref<128x128xbf16, #tpu.memory_space<vmem>>, vector<128x128xbf16>
    tpu.vector_store %arg3[%c0_3, %c0_4], %3 {strides = array<i32>} : memref<128x128xbf16, #tpu.memory_space<vmem>>, vector<128x128xbf16>,
    return
  }
  func.func @transform_0(%arg0: i32) -> (i32, i32) {
    %c0_i32 = arith.constant 0 : i32
    %c0_i32_0 = arith.constant 0 : i32
    return %arg0, %c0_i32 : i32, i32
  }
  func.func @transform_1(%arg0: i32) -> (i32, i32) {
    %c0_i32 = arith.constant 0 : i32
    %c0_i32_0 = arith.constant 0 : i32
    %c0_i32_1 = arith.constant 0 : i32
    return %c0_i32, %c0_i32_0 : i32, i32
  }
  func.func @transform_2(%arg0: i32) -> (i32, i32) {
    %c0_i32 = arith.constant 0 : i32
    %c0_i32_0 = arith.constant 0 : i32
    return %arg0, %c0_i32 : i32, i32
  }
}

module attributes {stable_mosaic.version = 11 : i64} {
  func.func @_conv_fused_kernel(%arg0: i32, %arg1: i32, %arg2: memref<128x128xbf16, #tpu.memory_space<vmem>>, %arg3: memref<256x128xbf16, #tpu.memory_space<vmem>>, %arg4: memref<1x128xf32, #tpu.memory_space<vmem>>, %arg5: memref<128x128xbf16, #tpu.memory_space<vmem>>, %arg6: memref<1x128xf32, #tpu.memory_space<vmem>>, %arg7: memref<128x128xf32, #tpu.memory_space<vmem>>, %arg8: memref<128x128xf32, #tpu.memory_space<vmem>>) attributes {dimension_semantics = [#tpu.dimension_semantics<parallel>, #tpu.dimension_semantics<arbitrary>], iteration_bounds = array<i64: 2, 2>, scalar_prefetch = 0 : i64, scratch_operands = 1 : i64, tpu.core_type = #tpu.core_type<tc>, window_params = [{transform_indices = @transform_0, window_bounds = array<i64: 128, 128>}, {pipeline_mode = #tpu.pipeline_mode<synchronous>, transform_indices = @transform_1, window_bounds = array<i64: 256, 128>}, {pipeline_mode = #tpu.pipeline_mode<synchronous>, transform_indices = @transform_2, window_bounds = array<i64: 1, 128>}, {pipeline_mode = #tpu.pipeline_mode<synchronous>, transform_indices = @transform_3, window_bounds = array<i64: 128, 128>}, {pipeline_mode = #tpu.pipeline_mode<synchronous>, transform_indices = @transform_4, window_bounds = array<i64: 1, 128>}, {transform_indices = @transform_5, window_bounds = array<i64: 128, 128>}]} {
    %c0_i32 = arith.constant 0 : i32
    %0 = arith.cmpi eq, %arg1, %c0_i32 : i32
    %1 = arith.extui %0 : i1 to i32
    %c0_i32_0 = arith.constant 0 : i32
    %2 = arith.cmpi ne, %1, %c0_i32_0 : i32
    scf.if %2 {
      %cst_8 = arith.constant 0.000000e+00 : f32
      %15 = vector.broadcast %cst_8 : f32 to vector<128x128xf32>
      %c0_9 = arith.constant 0 : index
      %c0_10 = arith.constant 0 : index
      %16 = vector.load %arg8[%c0_9, %c0_10] : memref<128x128xf32, #tpu.memory_space<vmem>>, vector<128x128xf32>
      tpu.vector_store %arg8[%c0_9, %c0_10], %15 {strides = array<i32>} : memref<128x128xf32, #tpu.memory_space<vmem>>, vector<128x128xf32>,
    } else {
    }
    %c128_i32 = arith.constant 128 : i32
    %3 = arith.muli %arg1, %c128_i32 : i32
    %4 = tpu.assume_multiple %3, 128 : i32
    %5 = arith.index_cast %4 : i32 to index
    %c0 = arith.constant 0 : index
    %6 = vector.load %arg3[%5, %c0] : memref<256x128xbf16, #tpu.memory_space<vmem>>, vector<128x128xbf16>
    %c0_1 = arith.constant 0 : index
    %c0_2 = arith.constant 0 : index
    %7 = vector.load %arg8[%c0_1, %c0_2] : memref<128x128xf32, #tpu.memory_space<vmem>>, vector<128x128xf32>
    %c0_3 = arith.constant 0 : index
    %c0_4 = arith.constant 0 : index
    %8 = vector.load %arg2[%c0_3, %c0_4] : memref<128x128xbf16, #tpu.memory_space<vmem>>, vector<128x128xbf16>
    %cst = arith.constant dense<0.000000e+00> : vector<128x128xf32>
    %9 = tpu.matmul %8, %6, %cst {dimension_numbers = #tpu.dot_dimension_numbers<[1], [0], [0], [1], [0, 0, 1, 1], [], []>} : vector<128x128xbf16>, vector<128x128xbf16>, vector<128x128xf32> -> vector<128x128xf32>
    %10 = arith.addf %7, %9 : vector<128x128xf32>
    %c0_5 = arith.constant 0 : index
    %c0_6 = arith.constant 0 : index
    %11 = vector.load %arg8[%c0_5, %c0_6] : memref<128x128xf32, #tpu.memory_space<vmem>>, vector<128x128xf32>
    tpu.vector_store %arg8[%c0_5, %c0_6], %10 {strides = array<i32>} : memref<128x128xf32, #tpu.memory_space<vmem>>, vector<128x128xf32>,
    %c1_i32 = arith.constant 1 : i32
    %12 = arith.cmpi eq, %arg1, %c1_i32 : i32
    %13 = arith.extui %12 : i1 to i32
    %c0_i32_7 = arith.constant 0 : i32
    %14 = arith.cmpi ne, %13, %c0_i32_7 : i32
    scf.if %14 {
      %c0_8 = arith.constant 0 : index
      %c0_9 = arith.constant 0 : index
      %15 = vector.load %arg8[%c0_8, %c0_9] : memref<128x128xf32, #tpu.memory_space<vmem>>, vector<128x128xf32>
      %c0_10 = arith.constant 0 : index
      %c0_11 = arith.constant 0 : index
      %16 = vector.load %arg4[%c0_10, %c0_11] : memref<1x128xf32, #tpu.memory_space<vmem>>, vector<1x128xf32>
      %17 = vector.broadcast %16 : vector<1x128xf32> to vector<128x128xf32>
      %18 = arith.addf %15, %17 : vector<128x128xf32>
      %19 = arith.truncf %18 : vector<128x128xf32> to vector<128x128xbf16>
      %c0_12 = arith.constant 0 : index
      %c0_13 = arith.constant 0 : index
      %20 = vector.load %arg5[%c0_12, %c0_13] : memref<128x128xbf16, #tpu.memory_space<vmem>>, vector<128x128xbf16>
      %cst_14 = arith.constant dense<0.000000e+00> : vector<128x128xf32>
      %21 = tpu.matmul %19, %20, %cst_14 {dimension_numbers = #tpu.dot_dimension_numbers<[1], [0], [0], [1], [0, 0, 1, 1], [], []>} : vector<128x128xbf16>, vector<128x128xbf16>, vector<128x128xf32> -> vector<128x128xf32>
      %c0_15 = arith.constant 0 : index
      %c0_16 = arith.constant 0 : index
      %22 = vector.load %arg6[%c0_15, %c0_16] : memref<1x128xf32, #tpu.memory_space<vmem>>, vector<1x128xf32>
      %23 = vector.broadcast %22 : vector<1x128xf32> to vector<128x128xf32>
      %24 = arith.addf %21, %23 : vector<128x128xf32>
      %c0_17 = arith.constant 0 : index
      %c0_18 = arith.constant 0 : index
      %25 = vector.load %arg7[%c0_17, %c0_18] : memref<128x128xf32, #tpu.memory_space<vmem>>, vector<128x128xf32>
      tpu.vector_store %arg7[%c0_17, %c0_18], %24 {strides = array<i32>} : memref<128x128xf32, #tpu.memory_space<vmem>>, vector<128x128xf32>,
    } else {
    }
    return
  }
  func.func @transform_0(%arg0: i32, %arg1: i32) -> (i32, i32) {
    %c0_i32 = arith.constant 0 : i32
    return %arg0, %arg1 : i32, i32
  }
  func.func @transform_1(%arg0: i32, %arg1: i32) -> (i32, i32) {
    %c0_i32 = arith.constant 0 : i32
    %c0_i32_0 = arith.constant 0 : i32
    %c0_i32_1 = arith.constant 0 : i32
    return %c0_i32, %c0_i32_0 : i32, i32
  }
  func.func @transform_2(%arg0: i32, %arg1: i32) -> (i32, i32) {
    %c0_i32 = arith.constant 0 : i32
    %c0_i32_0 = arith.constant 0 : i32
    %c0_i32_1 = arith.constant 0 : i32
    return %c0_i32, %c0_i32_0 : i32, i32
  }
  func.func @transform_3(%arg0: i32, %arg1: i32) -> (i32, i32) {
    %c0_i32 = arith.constant 0 : i32
    %c0_i32_0 = arith.constant 0 : i32
    %c0_i32_1 = arith.constant 0 : i32
    return %c0_i32, %c0_i32_0 : i32, i32
  }
  func.func @transform_4(%arg0: i32, %arg1: i32) -> (i32, i32) {
    %c0_i32 = arith.constant 0 : i32
    %c0_i32_0 = arith.constant 0 : i32
    %c0_i32_1 = arith.constant 0 : i32
    return %c0_i32, %c0_i32_0 : i32, i32
  }
  func.func @transform_5(%arg0: i32, %arg1: i32) -> (i32, i32) {
    %c0_i32 = arith.constant 0 : i32
    %c0_i32_0 = arith.constant 0 : i32
    return %arg0, %c0_i32 : i32, i32
  }
}

module attributes {stable_mosaic.version = 11 : i64} {
  func.func @_conv_fused_kernel(%arg0: i32, %arg1: i32, %arg2: memref<128x128xbf16, #tpu.memory_space<vmem>>, %arg3: memref<256x128xbf16, #tpu.memory_space<vmem>>, %arg4: memref<1x128xf32, #tpu.memory_space<vmem>>, %arg5: memref<128x128xbf16, #tpu.memory_space<vmem>>, %arg6: memref<1x128xf32, #tpu.memory_space<vmem>>, %arg7: memref<128x128xbf16, #tpu.memory_space<vmem>>, %arg8: memref<128x128xf32, #tpu.memory_space<vmem>>) attributes {dimension_semantics = [#tpu.dimension_semantics<parallel>, #tpu.dimension_semantics<arbitrary>], iteration_bounds = array<i64: 2, 2>, scalar_prefetch = 0 : i64, scratch_operands = 1 : i64, tpu.core_type = #tpu.core_type<tc>, window_params = [{transform_indices = @transform_0, window_bounds = array<i64: 128, 128>}, {pipeline_mode = #tpu.pipeline_mode<synchronous>, transform_indices = @transform_1, window_bounds = array<i64: 256, 128>}, {pipeline_mode = #tpu.pipeline_mode<synchronous>, transform_indices = @transform_2, window_bounds = array<i64: 1, 128>}, {pipeline_mode = #tpu.pipeline_mode<synchronous>, transform_indices = @transform_3, window_bounds = array<i64: 128, 128>}, {pipeline_mode = #tpu.pipeline_mode<synchronous>, transform_indices = @transform_4, window_bounds = array<i64: 1, 128>}, {transform_indices = @transform_5, window_bounds = array<i64: 128, 128>}]} {
    %c0_i32 = arith.constant 0 : i32
    %0 = arith.cmpi eq, %arg1, %c0_i32 : i32
    %1 = arith.extui %0 : i1 to i32
    %c0_i32_0 = arith.constant 0 : i32
    %2 = arith.cmpi ne, %1, %c0_i32_0 : i32
    scf.if %2 {
      %cst_8 = arith.constant 0.000000e+00 : f32
      %15 = vector.broadcast %cst_8 : f32 to vector<128x128xf32>
      %c0_9 = arith.constant 0 : index
      %c0_10 = arith.constant 0 : index
      %16 = vector.load %arg8[%c0_9, %c0_10] : memref<128x128xf32, #tpu.memory_space<vmem>>, vector<128x128xf32>
      tpu.vector_store %arg8[%c0_9, %c0_10], %15 {strides = array<i32>} : memref<128x128xf32, #tpu.memory_space<vmem>>, vector<128x128xf32>,
    } else {
    }
    %c128_i32 = arith.constant 128 : i32
    %3 = arith.muli %arg1, %c128_i32 : i32
    %4 = tpu.assume_multiple %3, 128 : i32
    %5 = arith.index_cast %4 : i32 to index
    %c0 = arith.constant 0 : index
    %6 = vector.load %arg3[%5, %c0] : memref<256x128xbf16, #tpu.memory_space<vmem>>, vector<128x128xbf16>
    %c0_1 = arith.constant 0 : index
    %c0_2 = arith.constant 0 : index
    %7 = vector.load %arg8[%c0_1, %c0_2] : memref<128x128xf32, #tpu.memory_space<vmem>>, vector<128x128xf32>
    %c0_3 = arith.constant 0 : index
    %c0_4 = arith.constant 0 : index
    %8 = vector.load %arg2[%c0_3, %c0_4] : memref<128x128xbf16, #tpu.memory_space<vmem>>, vector<128x128xbf16>
    %cst = arith.constant dense<0.000000e+00> : vector<128x128xf32>
    %9 = tpu.matmul %8, %6, %cst {dimension_numbers = #tpu.dot_dimension_numbers<[1], [0], [0], [1], [0, 0, 1, 1], [], []>} : vector<128x128xbf16>, vector<128x128xbf16>, vector<128x128xf32> -> vector<128x128xf32>
    %10 = arith.addf %7, %9 : vector<128x128xf32>
    %c0_5 = arith.constant 0 : index
    %c0_6 = arith.constant 0 : index
    %11 = vector.load %arg8[%c0_5, %c0_6] : memref<128x128xf32, #tpu.memory_space<vmem>>, vector<128x128xf32>
    tpu.vector_store %arg8[%c0_5, %c0_6], %10 {strides = array<i32>} : memref<128x128xf32, #tpu.memory_space<vmem>>, vector<128x128xf32>,
    %c1_i32 = arith.constant 1 : i32
    %12 = arith.cmpi eq, %arg1, %c1_i32 : i32
    %13 = arith.extui %12 : i1 to i32
    %c0_i32_7 = arith.constant 0 : i32
    %14 = arith.cmpi ne, %13, %c0_i32_7 : i32
    scf.if %14 {
      %c0_8 = arith.constant 0 : index
      %c0_9 = arith.constant 0 : index
      %15 = vector.load %arg8[%c0_8, %c0_9] : memref<128x128xf32, #tpu.memory_space<vmem>>, vector<128x128xf32>
      %c0_10 = arith.constant 0 : index
      %c0_11 = arith.constant 0 : index
      %16 = vector.load %arg4[%c0_10, %c0_11] : memref<1x128xf32, #tpu.memory_space<vmem>>, vector<1x128xf32>
      %17 = vector.broadcast %16 : vector<1x128xf32> to vector<128x128xf32>
      %18 = arith.addf %15, %17 : vector<128x128xf32>
      %cst_12 = arith.constant 0.000000e+00 : f32
      %19 = vector.broadcast %cst_12 : f32 to vector<128x128xf32>
      %20 = arith.maximumf %18, %19 : vector<128x128xf32>
      %21 = arith.truncf %20 : vector<128x128xf32> to vector<128x128xbf16>
      %c0_13 = arith.constant 0 : index
      %c0_14 = arith.constant 0 : index
      %22 = vector.load %arg5[%c0_13, %c0_14] : memref<128x128xbf16, #tpu.memory_space<vmem>>, vector<128x128xbf16>
      %cst_15 = arith.constant dense<0.000000e+00> : vector<128x128xf32>
      %23 = tpu.matmul %21, %22, %cst_15 {dimension_numbers = #tpu.dot_dimension_numbers<[1], [0], [0], [1], [0, 0, 1, 1], [], []>} : vector<128x128xbf16>, vector<128x128xbf16>, vector<128x128xf32> -> vector<128x128xf32>
      %c0_16 = arith.constant 0 : index
      %c0_17 = arith.constant 0 : index
      %24 = vector.load %arg6[%c0_16, %c0_17] : memref<1x128xf32, #tpu.memory_space<vmem>>, vector<1x128xf32>
      %25 = vector.broadcast %24 : vector<1x128xf32> to vector<128x128xf32>
      %26 = arith.addf %23, %25 : vector<128x128xf32>
      %27 = arith.truncf %26 : vector<128x128xf32> to vector<128x128xbf16>
      %c0_18 = arith.constant 0 : index
      %c0_19 = arith.constant 0 : index
      %28 = vector.load %arg7[%c0_18, %c0_19] : memref<128x128xbf16, #tpu.memory_space<vmem>>, vector<128x128xbf16>
      tpu.vector_store %arg7[%c0_18, %c0_19], %27 {strides = array<i32>} : memref<128x128xbf16, #tpu.memory_space<vmem>>, vector<128x128xbf16>,
    } else {
    }
    return
  }
  func.func @transform_0(%arg0: i32, %arg1: i32) -> (i32, i32) {
    %c0_i32 = arith.constant 0 : i32
    return %arg0, %arg1 : i32, i32
  }
  func.func @transform_1(%arg0: i32, %arg1: i32) -> (i32, i32) {
    %c0_i32 = arith.constant 0 : i32
    %c0_i32_0 = arith.constant 0 : i32
    %c0_i32_1 = arith.constant 0 : i32
    return %c0_i32, %c0_i32_0 : i32, i32
  }
  func.func @transform_2(%arg0: i32, %arg1: i32) -> (i32, i32) {
    %c0_i32 = arith.constant 0 : i32
    %c0_i32_0 = arith.constant 0 : i32
    %c0_i32_1 = arith.constant 0 : i32
    return %c0_i32, %c0_i32_0 : i32, i32
  }
  func.func @transform_3(%arg0: i32, %arg1: i32) -> (i32, i32) {
    %c0_i32 = arith.constant 0 : i32
    %c0_i32_0 = arith.constant 0 : i32
    %c0_i32_1 = arith.constant 0 : i32
    return %c0_i32, %c0_i32_0 : i32, i32
  }
  func.func @transform_4(%arg0: i32, %arg1: i32) -> (i32, i32) {
    %c0_i32 = arith.constant 0 : i32
    %c0_i32_0 = arith.constant 0 : i32
    %c0_i32_1 = arith.constant 0 : i32
    return %c0_i32, %c0_i32_0 : i32, i32
  }
  func.func @transform_5(%arg0: i32, %arg1: i32) -> (i32, i32) {
    %c0_i32 = arith.constant 0 : i32
    %c0_i32_0 = arith.constant 0 : i32
    return %arg0, %c0_i32 : i32, i32
  }
}

</mosaic_0001>

<bundles_post_ra>
// kernel: gcn_forward.3
= control target key start
LH: loop header
LB: loop body
LE: loop exit
PB: predicated region body
PF: predicated region fallthrough
CT: control target
= control target key end

     0   :  { %s814_s9 = smov 0   ;;  %s931_s0 = inlined_call_operand.vmem [shape: bf16[256,192], index: 0, kind: input, shape index: {}]   ;;  %s932_s1 = inlined_call_operand.vmem [shape: bf16[192,128], index: 1, kind: input, shape index: {}]   ;;  %s933_s2 = inlined_call_operand.vmem [shape: bf16[256,128], index: 2, kind: output, shape index: {}]  }
   0x1 LB: > { %s593_s10 = sadd.s32 4294967295, %s796_s9   ;;  %p597_p0 = scmp.ge.s32.totalorder %s796_s9, 1  ;;  %s796_s9 = sphi %s814_s9, %s12_s9  }
   0x2   : > { %p114_p1 = scmp.lt.s32.totalorder %s796_s9, 3 }
   0x4   : > { %p115_p2 = pnand %p597_p0, %p114_p1 }
   0x5   : > { %v754_v0 = vld [vmem:[%s932_s1] sm:$0xff] (!%p115_p2)   ;;  %v798_v1 = vmov (!%p115_p2), 0   ;;  %s598_s13 = sshll.u32 (!%p115_p2), %s593_s10, 4  ;;  %v755_v2 = vld [vmem:[%s932_s1 + $0x8] sm:$0xff] (!%p115_p2)   ;;  %v756_v3 = vld [vmem:[%s932_s1 + $0x10] sm:$0xff] (!%p115_p2)   ;;  %vm335_vm0 = vcmask (!%p115_p2), 523264  }
   0x6   : > { %118 = sbr.rel (%p115_p2) target bundleno = 295 (0x127), region = 28  ;;  %360 = vmatprep.subr.bf16.mxu0 (!%p115_p2), %v798_v1  ;;  %721 = vmatprep.subr.bf16.mxu1 (!%p115_p2), %v798_v1  ;;  %p138_p3 = scmp.lt.s32.totalorder (!%p115_p2), %s598_s13, 31  ;;  %v757_v4 = vld [vmem:[%s932_s1 + $0x18] sm:$0xff] (!%p115_p2)   ;;  %v758_v6 = vld [vmem:[%s932_s1 + $0x20] sm:$0xff] (!%p115_p2)   ;;  %v759_v8 = vld [vmem:[%s932_s1 + $0x28] sm:$0xff] (!%p115_p2)  }
   0x7   : > { %361 = vmatpush1.bf16.msra.mxu0 (!%p115_p2), %v754_v0  ;;  %733 = vmatpush1.bf16.msra.mxu1 (!%p115_p2), %v754_v0  ;;  %v760_v9 = vld [vmem:[%s932_s1 + $0x30] sm:$0xff] (!%p115_p2)   ;;  %v761_v10 = vld [vmem:[%s932_s1 + $0x38] sm:$0xff] (!%p115_p2)   ;;  %v762_v11 = vld [vmem:[%s932_s1 + $0x40] sm:$0xff] (!%p115_p2)  }
   0x8   : > { %362 = vmatprep.subr.bf16.mxu0 (!%p115_p2), %v798_v1  ;;  %722 = vmatprep.subr.bf16.mxu1 (!%p115_p2), %v798_v1  ;;  %v763_v12 = vld [vmem:[%s932_s1 + $0x48] sm:$0xff] (!%p115_p2)   ;;  %v764_v13 = vld [vmem:[%s932_s1 + $0x50] sm:$0xff] (!%p115_p2)   ;;  %v765_v14 = vld [vmem:[%s932_s1 + $0x58] sm:$0xff] (!%p115_p2)  }
   0xb   : > { %363 = vmatpush1.bf16.msra.mxu0 (!%p115_p2), %v755_v2  ;;  %734 = vmatpush1.bf16.msra.mxu1 (!%p115_p2), %v755_v2 }
   0xc   : > { %364 = vmatprep.subr.bf16.mxu0 (!%p115_p2), %v798_v1  ;;  %723 = vmatprep.subr.bf16.mxu1 (!%p115_p2), %v798_v1 }
   0xd   : > { %s935_s13 = smov (!%p138_p3, %s598_s13), 31 }
   0xe   : > { %s657_s18 = sshll.u32 %s935_s13, 3  ;;  %s602_s14 = sshll.u32 %s935_s13, 2 }
   0xf   : > { %365 = vmatpush1.bf16.msra.mxu0 %v756_v3  ;;  %735 = vmatpush1.bf16.msra.mxu1 %v756_v3  ;;  %s846_s23 = scalar_lea.vmem %s931_s0, %s657_s18  ;;  %s918_s17 = scalar_lea.vmem %s933_s2, %s602_s14 }
  0x10   : > { %366 = vmatprep.subr.bf16.mxu0 %v798_v1  ;;  %724 = vmatprep.subr.bf16.mxu1 %v798_v1  ;;  %v768_v5 = vld [vmem:[%s846_s23 + $0x4] ss:$8 sps:$4 sm:$0xff]   ;;  %v766_v15 = vld [vmem:[%s846_s23] ss:$8 sps:$4 sm:$0xff]   ;;  %v772_v17 = vld [vmem:[%s846_s23 + $0x14] ss:$8 sps:$4 sm:$0xff]  }
  0x11   : > { %v771_v7 = vld [vmem:[%s846_s23 + $0x44] ss:$8 sps:$4 sm:$0xff]   ;;  %631 = vmatprep.mubr.msk.bf16.mxu0 %vm335_vm0, %v768_v5  ;;  %v769_v16 = vld [vmem:[%s846_s23 + $0x40] ss:$8 sps:$4 sm:$0xff]   ;;  %v774_v18 = vld [vmem:[%s846_s23 + $0x54] ss:$8 sps:$4 sm:$0xff]  }
  0x12   : > { %635 = vmatprep.mubr.msk.bf16.mxu1 %vm335_vm0, %v771_v7  ;;  %v776_v19 = vld [vmem:[%s846_s23 + $0x10] ss:$8 sps:$4 sm:$0xff]   ;;  %v778_v21 = vld [vmem:[%s846_s23 + $0x24] ss:$8 sps:$4 sm:$0xff]   ;;  %v782_v23 = vld [vmem:[%s846_s23 + $0x20] ss:$8 sps:$4 sm:$0xff]  }
  0x13   : > { %367 = vmatpush1.bf16.msra.mxu0 %v757_v4  ;;  %736 = vmatpush1.bf16.msra.mxu1 %v757_v4  ;;  %v777_v20 = vld [vmem:[%s846_s23 + $0x50] ss:$8 sps:$4 sm:$0xff]   ;;  %v780_v22 = vld [vmem:[%s846_s23 + $0x64] ss:$8 sps:$4 sm:$0xff]   ;;  %v783_v24 = vld [vmem:[%s846_s23 + $0x60] ss:$8 sps:$4 sm:$0xff]  }
  0x14   : > { %368 = vmatprep.subr.bf16.mxu0 %v798_v1  ;;  %725 = vmatprep.subr.bf16.mxu1 %v798_v1  ;;  %v784_v25 = vld [vmem:[%s846_s23 + $0x34] ss:$8 sps:$4 sm:$0xff]   ;;  %v788_v27 = vld [vmem:[%s846_s23 + $0x30] ss:$8 sps:$4 sm:$0xff]  }
  0x15   : > { %v786_v26 = vld [vmem:[%s846_s23 + $0x74] ss:$8 sps:$4 sm:$0xff]   ;;  %v789_v28 = vld [vmem:[%s846_s23 + $0x70] ss:$8 sps:$4 sm:$0xff]  }
  0x17   : > { %369 = vmatpush1.bf16.msra.mxu0 %v758_v6  ;;  %737 = vmatpush1.bf16.msra.mxu1 %v758_v6 }
  0x18   : > { %370 = vmatprep.subr.bf16.mxu0 %v798_v1  ;;  %726 = vmatprep.subr.bf16.mxu1 %v798_v1 }
  0x1b   : > { %371 = vmatpush1.bf16.msra.mxu0 %v759_v8  ;;  %738 = vmatpush1.bf16.msra.mxu1 %v759_v8 }
  0x1c   : > { %372 = vmatprep.subr.bf16.mxu0 %v798_v1  ;;  %727 = vmatprep.subr.bf16.mxu1 %v798_v1 }
  0x1f   : > { %373 = vmatpush1.bf16.msra.mxu0 %v760_v9  ;;  %739 = vmatpush1.bf16.msra.mxu1 %v760_v9 }
  0x20   : > { %374 = vmatprep.subr.bf16.mxu0 %v798_v1  ;;  %728 = vmatprep.subr.bf16.mxu1 %v798_v1 }
  0x23   : > { %375 = vmatpush1.bf16.msra.mxu0 %v761_v10  ;;  %740 = vmatpush1.bf16.msra.mxu1 %v761_v10 }
  0x24   : > { %376 = vmatprep.subr.bf16.mxu0 %v798_v1  ;;  %729 = vmatprep.subr.bf16.mxu1 %v798_v1 }
  0x27   : > { %377 = vmatpush1.bf16.msra.mxu0 %v762_v11  ;;  %741 = vmatpush1.bf16.msra.mxu1 %v762_v11 }
  0x28   : > { %378 = vmatprep.subr.bf16.mxu0 %v798_v1  ;;  %730 = vmatprep.subr.bf16.mxu1 %v798_v1 }
  0x2b   : > { %379 = vmatpush1.bf16.msra.mxu0 %v763_v12  ;;  %742 = vmatpush1.bf16.msra.mxu1 %v763_v12 }
  0x2c   : > { %380 = vmatprep.subr.bf16.mxu0 %v798_v1  ;;  %731 = vmatprep.subr.bf16.mxu1 %v798_v1 }
  0x2f   : > { %381 = vmatpush1.bf16.msra.mxu0 %v764_v13  ;;  %743 = vmatpush1.bf16.msra.mxu1 %v764_v13 }
  0x30   : > { %382 = vmatprep.subr.bf16.mxu0 %v798_v1  ;;  %732 = vmatprep.subr.bf16.mxu1 %v798_v1 }
  0x33   : > { %383 = vmatpush1.bf16.msra.mxu0 %v765_v14  ;;  %744 = vmatpush1.bf16.msra.mxu1 %v765_v14 }
  0x36   : > { %393 = vmatmul.mubr.bf16.vlgmr.msra.gmra.mrb[0].mxu0 %v766_v15  ;;  %425 = vmatmul.mubr.bf16.vlgmr.msra.gmra.mrb[0].mxu1 %v769_v16 }
  0x37   : > { %632 = vmatprep.mubr.msk.bf16.mxu0 %vm335_vm0, %v772_v17  ;;  %636 = vmatprep.mubr.msk.bf16.mxu1 %vm335_vm0, %v774_v18 }
  0x3e   : > { %401 = vmatmul.mubr.bf16.gmra.mrb[4].mxu0 %v776_v19  ;;  %433 = vmatmul.mubr.bf16.gmra.mrb[4].mxu1 %v777_v20 }
  0x3f   : > { %633 = vmatprep.mubr.msk.bf16.mxu0 %vm335_vm0, %v778_v21  ;;  %637 = vmatprep.mubr.msk.bf16.mxu1 %vm335_vm0, %v780_v22 }
  0x46   : > { %409 = vmatmul.mubr.bf16.gmra.mrb[8].mxu0 %v782_v23  ;;  %441 = vmatmul.mubr.bf16.gmra.mrb[8].mxu1 %v783_v24 }
  0x47   : > { %634 = vmatprep.mubr.msk.bf16.mxu0 %vm335_vm0, %v784_v25  ;;  %638 = vmatprep.mubr.msk.bf16.mxu1 %vm335_vm0, %v786_v26 }
  0x4e   : > { %417 = vmatmul.mubr.bf16.gmra.mrb[12].mxu0 %v788_v27  ;;  %449 = vmatmul.mubr.bf16.gmra.mrb[12].mxu1 %v789_v28 }
 0x109   : > { %v394_v29 = vpop.f32.mrb[0].mxu0  ;;  %v426_v30 = vpop.f32.mrb[0].mxu1 }
 0x10a   : > { %v396_v31 = vpop.f32.mrb[1].mxu0  ;;  %v428_v32 = vpop.f32.mrb[1].mxu1 }
 0x10b   : > { %v397_v33 = vpop.f32.mrb[2].mxu0  ;;  %v429_v34 = vpop.f32.mrb[2].mxu1 }
 0x10c   : > { %v677_v35 = vpack.c.bf16 %v397_v33, %v394_v29  ;;  %v697_v36 = vpack.c.bf16 %v429_v34, %v426_v30  ;;  %v399_v37 = vpop.f32.mrb[3].mxu0  ;;  %v431_v38 = vpop.f32.mrb[3].mxu1 }
 0x10e   : > { %678 = vst [vmem:[%s918_s17] sm:$0xff] %v677_v35   ;;  %717 = vst [vmem:[%s918_s17 + $0x20] sm:$0xff] %v697_v36  }
 0x111   : > { %v402_v39 = vpop.f32.mrb[4].mxu0  ;;  %v434_v40 = vpop.f32.mrb[4].mxu1 }
 0x112   : > { %v404_v41 = vpop.f32.mrb[5].mxu0  ;;  %v436_v42 = vpop.f32.mrb[5].mxu1 }
 0x113   : > { %v405_v43 = vpop.f32.mrb[6].mxu0  ;;  %v437_v44 = vpop.f32.mrb[6].mxu1 }
 0x114   : > { %v682_v45 = vpack.c.bf16 %v405_v43, %v402_v39  ;;  %v702_v46 = vpack.c.bf16 %v437_v44, %v434_v40  ;;  %v407_v47 = vpop.f32.mrb[7].mxu0  ;;  %v439_v48 = vpop.f32.mrb[7].mxu1 }
 0x116   : > { %714 = vst [vmem:[%s918_s17 + $0x8] sm:$0xff] %v682_v45   ;;  %718 = vst [vmem:[%s918_s17 + $0x28] sm:$0xff] %v702_v46  }
 0x119   : > { %v410_v49 = vpop.f32.mrb[8].mxu0  ;;  %v442_v50 = vpop.f32.mrb[8].mxu1 }
 0x11a   : > { %v412_v51 = vpop.f32.mrb[9].mxu0  ;;  %v444_v52 = vpop.f32.mrb[9].mxu1 }
 0x11b   : > { %v413_v53 = vpop.f32.mrb[10].mxu0  ;;  %v445_v54 = vpop.f32.mrb[10].mxu1 }
 0x11c   : > { %v687_v55 = vpack.c.bf16 %v413_v53, %v410_v49  ;;  %v707_v56 = vpack.c.bf16 %v445_v54, %v442_v50  ;;  %v415_v57 = vpop.f32.mrb[11].mxu0  ;;  %v447_v58 = vpop.f32.mrb[11].mxu1 }
 0x11e   : > { %715 = vst [vmem:[%s918_s17 + $0x10] sm:$0xff] %v687_v55   ;;  %719 = vst [vmem:[%s918_s17 + $0x30] sm:$0xff] %v707_v56  }
 0x121   : > { %v418_v59 = vpop.f32.mrb[12].mxu0  ;;  %v450_v60 = vpop.f32.mrb[12].mxu1 }
 0x122   : > { %v420_v61 = vpop.f32.mrb[13].mxu0  ;;  %v452_v62 = vpop.f32.mrb[13].mxu1 }
 0x123   : > { %v421_v63 = vpop.f32.mrb[14].mxu0  ;;  %v453_v0 = vpop.f32.mrb[14].mxu1 }
 0x124   : > { %v692_v1 = vpack.c.bf16 %v421_v63, %v418_v59  ;;  %v712_v2 = vpack.c.bf16 %v453_v0, %v450_v60  ;;  %v423_v3 = vpop.f32.mrb[15].mxu0  ;;  %v455_v4 = vpop.f32.mrb[15].mxu1 }
 0x126   : > { %716 = vst [vmem:[%s918_s17 + $0x18] sm:$0xff] %v692_v1   ;;  %720 = vst [vmem:[%s918_s17 + $0x38] sm:$0xff] %v712_v2  }
 0x127 PF: > { %s12_s9 = sadd.s32 1, %s796_s9  }
 0x128   : > { %p9_p4 = scmp.ge.s32.totalorder %s12_s9, 4  }
 0x12a   :  { %11 = sbr.rel (!%p9_p4) target bundleno = 1 (0x1), region = 58 }

// kernel: gcn_forward.4
= control target key start
LH: loop header
LB: loop body
LE: loop exit
PB: predicated region body
PF: predicated region fallthrough
CT: control target
= control target key end

     0   :  { %s1457_s18 = smov 0   ;;  %s1459_s19 = smov 0   ;;  %s1647_s0 = inlined_call_operand.vmem [shape: bf16[256,256], index: 0, kind: input, shape index: {}]   ;;  %s1648_s1 = inlined_call_operand.vmem [shape: bf16[256,128], index: 1, kind: input, shape index: {}]   ;;  %s1649_s2 = inlined_call_operand.vmem [shape: f32[1,128], index: 2, kind: input, shape index: {}]   ;;  %s1650_s3 = inlined_call_operand.vmem [shape: bf16[128,128], index: 3, kind: input, shape index: {}]   ;;  %s1651_s4 = inlined_call_operand.vmem [shape: f32[1,128], index: 4, kind: input, shape index: {}]   ;;  %s1652_s5 = inlined_call_operand.vmem [shape: bf16[256,128], index: 5, kind: output, shape index: {}]  }
   0x1   :  { %s1461_s20 = smov 0   ;;  %s1463_s21 = smov 0  }
   0x2   :  { %s1465_s22 = smov 0   ;;  %s1467_s23 = smov 0  }
   0x3   :  { %s1469_s24 = smov 0  }
   0x4 LB: > { %s24_s25 = sadd.s32 1, %s1416_s22  ;;  %s27_s26 = sadd.s32 1, %s1420_s23  ;;  %s1424_s24 = sphi %s1469_s24, %s15_s24   ;;  %s1420_s23 = sphi %s1467_s23, %s1658_s23   ;;  %s1416_s22 = sphi %s1465_s22, %s1657_s22   ;;  %s1412_s21 = sphi %s1463_s21, %s1656_s21   ;;  %s1408_s20 = sphi %s1461_s20, %s1655_s20   ;;  %s1404_s19 = sphi %s1459_s19, %s1654_s19   ;;  %s1400_s18 = sphi %s1457_s18, %s1653_s18  }
   0x5   : > { %p25_p0 = scmp.ge.s32.totalorder %s24_s25, 2  ;;  %p43_p1 = scmp.ne.s32.totalorder %s1404_s19, %s1400_s18 }
   0x6   : > { %p44_p2 = scmp.eq.s32.totalorder %s1424_s24, 0  ;;  %s36_s30 = sadd.s32 1, %s1404_s19 }
   0x7   : > { %s1660_s25 = smov (%p25_p0, %s24_s25), 0  ;;  %s1662_s26 = smov (!%p25_p0, %s27_s26), %s1420_s23 }
   0x8   : > { %p45_p3 = por %p44_p2, %p43_p1  ;;  %p29_p4 = scmp.ge.s32.totalorder %s1662_s26, 2 }
   0x9   : > { %s32_s27 = ssub.s32 %s1416_s22, %s1660_s25  ;;  %p1040_p6 = scmp.ge.s32.totalorder %s1424_s24, 4 }
   0xa   : > { %s1664_s26 = smov (%p29_p4, %s1662_s26), 0 }
   0xb   : > { %s31_s28 = ssub.s32 %s1420_s23, %s1664_s26  ;;  %191 = sbr.rel (%p1040_p6) target bundleno = 34 (0x22), region = 32 }
   0xc   : > { %s33_s29 = sor.u32 %s32_s27, %s31_s28 }
   0xd   : > { %p34_p5 = scmp.eq.s32.totalorder %s33_s29, 0 }
   0xf   : > { %s1508_s6 = scalar_select %p34_p5, %s1404_s19, %s36_s30  }
  0x12   : > { %194 = sbr.rel (!%p45_p3) target bundleno = 34 (0x22), region = 36  ;;  %s196_s7 = sand.u32 (%p45_p3), 1, %s1404_s19  }
  0x13   : > { %s1097_s8 = sshll.u32 (%p45_p3), %s1420_s23, 5  ;;  %s1041_s9 = sshll.u32 (%p45_p3), %s196_s7, 6 }
  0x14   : > { %s201_s10 = sadd.s32 (%p45_p3), %s1416_s22, %s1097_s8  ;;  %s198_s15 = scalar_lea.vmem (%p45_p3), [#allocation3], %s1041_s9 }
  0x15   : > { %s1044_s11 = sshll.u32 (%p45_p3), %s201_s10, 2 }
  0x16   : > { %s1517_s14 = scalar_lea.vmem (%p45_p3), %s1647_s0, %s1044_s11 }
  0x17   : > { %v219_v0 = vld [vmem:[%s1517_s14] sm:$0xf] (%p45_p3)  ;;  %v221_v1 = vld [vmem:[%s1517_s14 + $0x8] sm:$0xf] (%p45_p3)  ;;  %v223_v2 = vld [vmem:[%s1517_s14 + $0x10] sm:$0xf] (%p45_p3) }
  0x18   : > { %220 = vst [vmem:[%s198_s15] sm:$0xf] (%p45_p3), %v219_v0  ;;  %222 = vst [vmem:[%s198_s15 + $0x4] sm:$0xf] (%p45_p3), %v221_v1  ;;  %v225_v3 = vld [vmem:[%s1517_s14 + $0x18] sm:$0xf] (%p45_p3) }
  0x19   : > { %224 = vst [vmem:[%s198_s15 + $0x8] sm:$0xf] %v223_v2  ;;  %v227_v4 = vld [vmem:[%s1517_s14 + $0x20] sm:$0xf]  ;;  %v229_v5 = vld [vmem:[%s1517_s14 + $0x28] sm:$0xf] }
  0x1a   : > { %226 = vst [vmem:[%s198_s15 + $0xc] sm:$0xf] %v225_v3  ;;  %228 = vst [vmem:[%s198_s15 + $0x10] sm:$0xf] %v227_v4  ;;  %v231_v6 = vld [vmem:[%s1517_s14 + $0x30] sm:$0xf] }
  0x1b   : > { %230 = vst [vmem:[%s198_s15 + $0x14] sm:$0xf] %v229_v5  ;;  %v233_v7 = vld [vmem:[%s1517_s14 + $0x38] sm:$0xf]  ;;  %v235_v8 = vld [vmem:[%s1517_s14 + $0x40] sm:$0xf] }
  0x1c   : > { %232 = vst [vmem:[%s198_s15 + $0x18] sm:$0xf] %v231_v6  ;;  %234 = vst [vmem:[%s198_s15 + $0x1c] sm:$0xf] %v233_v7  ;;  %v237_v9 = vld [vmem:[%s1517_s14 + $0x48] sm:$0xf] }
  0x1d   : > { %236 = vst [vmem:[%s198_s15 + $0x20] sm:$0xf] %v235_v8  ;;  %v239_v10 = vld [vmem:[%s1517_s14 + $0x50] sm:$0xf]  ;;  %v241_v11 = vld [vmem:[%s1517_s14 + $0x58] sm:$0xf] }
  0x1e   : > { %238 = vst [vmem:[%s198_s15 + $0x24] sm:$0xf] %v237_v9  ;;  %240 = vst [vmem:[%s198_s15 + $0x28] sm:$0xf] %v239_v10  ;;  %v243_v12 = vld [vmem:[%s1517_s14 + $0x60] sm:$0xf] }
  0x1f   : > { %242 = vst [vmem:[%s198_s15 + $0x2c] sm:$0xf] %v241_v11  ;;  %v245_v13 = vld [vmem:[%s1517_s14 + $0x68] sm:$0xf]  ;;  %v247_v14 = vld [vmem:[%s1517_s14 + $0x70] sm:$0xf] }
  0x20   : > { %244 = vst [vmem:[%s198_s15 + $0x30] sm:$0xf] %v243_v12  ;;  %246 = vst [vmem:[%s198_s15 + $0x34] sm:$0xf] %v245_v13  ;;  %v249_v15 = vld [vmem:[%s1517_s14 + $0x78] sm:$0xf] }
  0x21   : > { %248 = vst [vmem:[%s198_s15 + $0x38] sm:$0xf] %v247_v14  ;;  %250 = vst [vmem:[%s198_s15 + $0x3c] sm:$0xf] %v249_v15 }
  0x22 PF: > { %p1045_p7 = scmp.ge.s32.totalorder %s1424_s24, 1  ;;  %p304_p8 = scmp.lt.s32.totalorder %s1424_s24, 5 }
  0x24   : > { %p305_p9 = pnand %p1045_p7, %p304_p8 }
  0x25   : > { %s311_s16 = sand.u32 (!%p305_p9), 1, %s1400_s18   ;;  %s1047_s17 = sshll.u32 (!%p305_p9), %s1412_s21, 4 }
  0x26   : > { %308 = sbr.rel (%p305_p9) target bundleno = 553 (0x229), region = 77  ;;  %s1046_s27 = sshll.u32 (!%p305_p9), %s311_s16, 6 }
  0x27   : > { %p340_p10 = scmp.lt.s32.totalorder (!%p305_p9), %s1047_s17, 31  ;;  %s1544_s8 = scalar_lea.vmem (!%p305_p9), [#allocation3], %s1046_s27 }
  0x28   : > { %p1049_p11 = scmp.ne.s32.totalorder (!%p305_p9), %s1408_s20, 0 }
  0x2d   : > { %s1666_s17 = smov (!%p340_p10, %s1047_s17), 31  ;;  %349 = sbr.rel (%p1049_p11) target bundleno = 55 (0x37), region = 85 }
  0x2e   : > { %s1048_s28 = sshll.u32 %s1666_s17, 2  ;;  %v1426_v16 = vmov (!%p1049_p11), 0.0  }
  0x2f   : > { %s1542_s7 = scalar_lea.vmem %s1652_s5, %s1048_s28  ;;  %350 = vst [vmem:[#allocation2] sm:$0xff] (!%p1049_p11), %v1426_v16  ;;  %351 = vst [vmem:[#allocation2 + $0x8] sm:$0xff] (!%p1049_p11), %v1426_v16 }
  0x30   : > { %352 = vst [vmem:[#allocation2 + $0x10] sm:$0xff] (!%p1049_p11), %v1426_v16  ;;  %353 = vst [vmem:[#allocation2 + $0x18] sm:$0xff] (!%p1049_p11), %v1426_v16 }
  0x31   : > { %354 = vst [vmem:[#allocation2 + $0x20] sm:$0xff] (!%p1049_p11), %v1426_v16  ;;  %355 = vst [vmem:[#allocation2 + $0x28] sm:$0xff] (!%p1049_p11), %v1426_v16 }
  0x32   : > { %356 = vst [vmem:[#allocation2 + $0x30] sm:$0xff] (!%p1049_p11), %v1426_v16  ;;  %357 = vst [vmem:[#allocation2 + $0x38] sm:$0xff] (!%p1049_p11), %v1426_v16 }
  0x33   : > { %358 = vst [vmem:[#allocation2 + $0x40] sm:$0xff] (!%p1049_p11), %v1426_v16  ;;  %359 = vst [vmem:[#allocation2 + $0x48] sm:$0xff] (!%p1049_p11), %v1426_v16 }
  0x34   : > { %360 = vst [vmem:[#allocation2 + $0x50] sm:$0xff] %v1426_v16  ;;  %361 = vst [vmem:[#allocation2 + $0x58] sm:$0xff] %v1426_v16 }
  0x35   : > { %362 = vst [vmem:[#allocation2 + $0x60] sm:$0xff] %v1426_v16  ;;  %363 = vst [vmem:[#allocation2 + $0x68] sm:$0xff] %v1426_v16 }
  0x36   : > { %364 = vst [vmem:[#allocation2 + $0x70] sm:$0xff] %v1426_v16  ;;  %365 = vst [vmem:[#allocation2 + $0x78] sm:$0xff] %v1426_v16 }
  0x37 PF: > { %s1050_s18 = sshll.u32 %s1408_s20, 7  ;;  %v1354_v17 = vld [vmem:[%s1544_s8] sm:$0xff]   ;;  %v1356_v27 = vld [vmem:[%s1544_s8 + $0x8] sm:$0xff]   ;;  %v1358_v29 = vld [vmem:[%s1544_s8 + $0x10] sm:$0xff]   ;;  %p1068_p12 = scmp.ne.s32.totalorder %s1408_s20, 1 }
  0x38   : > { %s367_s21 = sshra.s32 %s1050_s18, 3  ;;  %v1355_v18 = vld [vmem:[%s1544_s8 + $0x20] sm:$0xff]   ;;  %1209 = vmatprep.mubr.bf16.mxu0 %v1354_v17  ;;  %v1357_v28 = vld [vmem:[%s1544_s8 + $0x28] sm:$0xff]   ;;  %v1359_v30 = vld [vmem:[%s1544_s8 + $0x30] sm:$0xff]  }
  0x39   : > { %s1051_s9 = sshll.u32 %s367_s21, 2  ;;  %1217 = vmatprep.mubr.bf16.mxu1 %v1355_v18  ;;  %v1360_v31 = vld [vmem:[%s1544_s8 + $0x18] sm:$0xff]   ;;  %v387_v35 = vld [vmem:[#allocation2] sm:$0xff]  ;;  %v388_v45 = vld [vmem:[#allocation2 + $0x8] sm:$0xff] }
  0x3a   : > { %s1553_s12 = scalar_lea.vmem %s1648_s1, %s1051_s9  ;;  %v1361_v32 = vld [vmem:[%s1544_s8 + $0x38] sm:$0xff]   ;;  %v389_v33 = vld [vmem:[#allocation2 + $0x10] sm:$0xff]  ;;  %v1362_v17 = vld [vmem:[%s1650_s3] sm:$0xff] (!%p1068_p12)  }
  0x3b   : > { %v1346_v19 = vld [vmem:[%s1553_s12] sm:$0xff]   ;;  %v1347_v20 = vld [vmem:[%s1553_s12 + $0x8] sm:$0xff]   ;;  %v1348_v21 = vld [vmem:[%s1553_s12 + $0x10] sm:$0xff]  }
  0x3c   : > { %1193 = vmatprep.subr.bf16.mxu0 %v1346_v19  ;;  %1257 = vmatprep.subr.bf16.mxu1 %v1346_v19  ;;  %v1349_v22 = vld [vmem:[%s1553_s12 + $0x18] sm:$0xff]   ;;  %v1350_v23 = vld [vmem:[%s1553_s12 + $0x20] sm:$0xff]   ;;  %v1351_v24 = vld [vmem:[%s1553_s12 + $0x28] sm:$0xff]  }
  0x3d   : > { %1194 = vmatpush3.bf16.msra.mxu0 %v1346_v19  ;;  %1265 = vmatpush3.bf16.msra.mxu1 %v1346_v19  ;;  %v1352_v25 = vld [vmem:[%s1553_s12 + $0x30] sm:$0xff]   ;;  %v1353_v26 = vld [vmem:[%s1553_s12 + $0x38] sm:$0xff]   ;;  %v395_v36 = vld [vmem:[#allocation2 + $0x40] sm:$0xff] }
  0x3e   : > { %1195 = vmatprep.subr.bf16.mxu0 %v1347_v20  ;;  %1258 = vmatprep.subr.bf16.mxu1 %v1347_v20  ;;  %v397_v34 = vld [vmem:[#allocation2 + $0x50] sm:$0xff]  ;;  %v390_v39 = vld [vmem:[#allocation2 + $0x18] sm:$0xff]  ;;  %v396_v46 = vld [vmem:[#allocation2 + $0x48] sm:$0xff] }
  0x3f   : > { %v398_v40 = vld [vmem:[#allocation2 + $0x58] sm:$0xff]  ;;  %v393_v57 = vld [vmem:[#allocation2 + $0x30] sm:$0xff]  ;;  %v391_v59 = vld [vmem:[#allocation2 + $0x20] sm:$0xff] }
  0x40   : > { %v401_v58 = vld [vmem:[#allocation2 + $0x70] sm:$0xff]  ;;  %v399_v60 = vld [vmem:[#allocation2 + $0x60] sm:$0xff]  ;;  %v394_v63 = vld [vmem:[#allocation2 + $0x38] sm:$0xff] }
  0x41   : > { %1196 = vmatpush3.bf16.msra.mxu0 %v1347_v20  ;;  %1266 = vmatpush3.bf16.msra.mxu1 %v1347_v20  ;;  %v402_v0 = vld [vmem:[#allocation2 + $0x78] sm:$0xff]  ;;  %v392_v5 = vld [vmem:[#allocation2 + $0x28] sm:$0xff]  ;;  %v1364_v19 = vld [vmem:[%s1650_s3 + $0x10] sm:$0xff] (!%p1068_p12)  }
  0x42   : > { %1197 = vmatprep.subr.bf16.mxu0 %v1348_v21  ;;  %1259 = vmatprep.subr.bf16.mxu1 %v1348_v21  ;;  %v400_v6 = vld [vmem:[#allocation2 + $0x68] sm:$0xff]  ;;  %v1365_v20 = vld [vmem:[%s1650_s3 + $0x18] sm:$0xff] (!%p1068_p12)  }
  0x43   : > { %v1363_v18 = vld [vmem:[%s1650_s3 + $0x8] sm:$0xff] (!%p1068_p12)  }
  0x45   : > { %1198 = vmatpush3.bf16.msra.mxu0 %v1348_v21  ;;  %1267 = vmatpush3.bf16.msra.mxu1 %v1348_v21 }
  0x46   : > { %1199 = vmatprep.subr.bf16.mxu0 %v1349_v22  ;;  %1260 = vmatprep.subr.bf16.mxu1 %v1349_v22 }
  0x49   : > { %1200 = vmatpush3.bf16.msra.mxu0 %v1349_v22  ;;  %1268 = vmatpush3.bf16.msra.mxu1 %v1349_v22 }
  0x4a   : > { %1201 = vmatprep.subr.bf16.mxu0 %v1350_v23  ;;  %1261 = vmatprep.subr.bf16.mxu1 %v1350_v23 }
  0x4d   : > { %1202 = vmatpush3.bf16.msra.mxu0 %v1350_v23  ;;  %1269 = vmatpush3.bf16.msra.mxu1 %v1350_v23  ;;  %v1585_v23 = vld [vmem:[%s1649_s2] ss:$0 sm:$0xff] (!%p1068_p12) }
  0x4e   : > { %1203 = vmatprep.subr.bf16.mxu0 %v1351_v24  ;;  %1262 = vmatprep.subr.bf16.mxu1 %v1351_v24 }
  0x51   : > { %1204 = vmatpush3.bf16.msra.mxu0 %v1351_v24  ;;  %1270 = vmatpush3.bf16.msra.mxu1 %v1351_v24 }
  0x52   : > { %1205 = vmatprep.subr.bf16.mxu0 %v1352_v25  ;;  %1263 = vmatprep.subr.bf16.mxu1 %v1352_v25 }
  0x55   : > { %1206 = vmatpush3.bf16.msra.mxu0 %v1352_v25  ;;  %1271 = vmatpush3.bf16.msra.mxu1 %v1352_v25 }
  0x56   : > { %1207 = vmatprep.subr.bf16.mxu0 %v1353_v26  ;;  %1264 = vmatprep.subr.bf16.mxu1 %v1353_v26 }
  0x59   : > { %1208 = vmatpush3.bf16.msra.mxu0 %v1353_v26  ;;  %1272 = vmatpush3.bf16.msra.mxu1 %v1353_v26 }
  0x5a   : > { %1225 = vmatprep.subr.bf16.mxu0 (!%p1068_p12), %v1362_v17  ;;  %1273 = vmatprep.subr.bf16.mxu1 (!%p1068_p12), %v1362_v17 }
  0x5c   : > { %1210 = vmatmul.mubr.bf16.vlgmr.msra.gmra.mrb[0].mxu0 %v1356_v27  ;;  %1218 = vmatmul.mubr.bf16.vlgmr.msra.gmra.mrb[0].mxu1 %v1357_v28 }
  0x5d   : > { %1213 = vmatprep.mubr.bf16.mxu0 %v1358_v29  ;;  %1221 = vmatprep.mubr.bf16.mxu1 %v1359_v30 }
  0x5e   : > { %1226 = vmatpush3.bf16.msra.mxu0 (!%p1068_p12), %v1362_v17  ;;  %1281 = vmatpush3.bf16.msra.mxu1 (!%p1068_p12), %v1362_v17 }
  0x5f   : > { %1227 = vmatprep.subr.bf16.mxu0 (!%p1068_p12), %v1363_v18  ;;  %1274 = vmatprep.subr.bf16.mxu1 (!%p1068_p12), %v1363_v18 }
  0x62   : > { %1228 = vmatpush3.bf16.msra.mxu0 (!%p1068_p12), %v1363_v18  ;;  %1282 = vmatpush3.bf16.msra.mxu1 (!%p1068_p12), %v1363_v18 }
  0x63   : > { %1229 = vmatprep.subr.bf16.mxu0 (!%p1068_p12), %v1364_v19  ;;  %1275 = vmatprep.subr.bf16.mxu1 (!%p1068_p12), %v1364_v19 }
  0x64   : > { %1214 = vmatmul.mubr.bf16.gmra.mrb[4].mxu0 %v1360_v31  ;;  %1222 = vmatmul.mubr.bf16.gmra.mrb[4].mxu1 %v1361_v32  ;;  %v1366_v32 = vld [vmem:[%s1650_s3 + $0x20] sm:$0xff] (!%p1068_p12)  }
  0x66   : > { %1230 = vmatpush3.bf16.msra.mxu0 (!%p1068_p12), %v1364_v19  ;;  %1283 = vmatpush3.bf16.msra.mxu1 (!%p1068_p12), %v1364_v19  ;;  %v1070_v19 = vld [vmem:[%s1651_s4] ss:$0 sm:$0xff] (!%p1068_p12) }
  0x67   : > { %1231 = vmatprep.subr.bf16.mxu0 (!%p1068_p12), %v1365_v20  ;;  %1276 = vmatprep.subr.bf16.mxu1 (!%p1068_p12), %v1365_v20 }
  0x6a   : > { %1232 = vmatpush3.bf16.msra.mxu0 (!%p1068_p12), %v1365_v20  ;;  %1284 = vmatpush3.bf16.msra.mxu1 (!%p1068_p12), %v1365_v20 }
  0x6b   : > { %1233 = vmatprep.subr.bf16.mxu0 (!%p1068_p12), %v1366_v32  ;;  %1277 = vmatprep.subr.bf16.mxu1 (!%p1068_p12), %v1366_v32 }
  0x6e   : > { %1234 = vmatpush3.bf16.msra.mxu0 (!%p1068_p12), %v1366_v32  ;;  %1285 = vmatpush3.bf16.msra.mxu1 (!%p1068_p12), %v1366_v32 }
 0x12f   : > { %v1211_v37 = vpop.f32.mrb[0].mxu0  ;;  %v1219_v38 = vpop.f32.mrb[0].mxu1 }
 0x130   : > { %v614_v41 = vadd.f32 %v1211_v37, %v389_v33  ;;  %v622_v42 = vadd.f32 %v1219_v38, %v397_v34  ;;  %v549_v43 = vpop.f32.mrb[1].mxu0  ;;  %v581_v44 = vpop.f32.mrb[1].mxu1  ;;  %v1367_v37 = vld [vmem:[%s1650_s3 + $0x28] sm:$0xff] (!%p1068_p12)   ;;  %v1368_v38 = vld [vmem:[%s1650_s3 + $0x30] sm:$0xff] (!%p1068_p12)  }
 0x131   : > { %v612_v47 = vadd.f32 %v549_v43, %v387_v35  ;;  %v620_v48 = vadd.f32 %v581_v44, %v395_v36  ;;  %v1212_v49 = vpop.f32.mrb[2].mxu0  ;;  %v1220_v50 = vpop.f32.mrb[2].mxu1  ;;  %1235 = vmatprep.subr.bf16.mxu0 (!%p1068_p12), %v1367_v37  ;;  %1278 = vmatprep.subr.bf16.mxu1 (!%p1068_p12), %v1367_v37 }
 0x132   : > { %630 = vst [vmem:[#allocation2 + $0x10] sm:$0xff] %v614_v41  ;;  %638 = vst [vmem:[#allocation2 + $0x50] sm:$0xff] %v622_v42  ;;  %v615_v51 = vadd.f32 %v1212_v49, %v390_v39  ;;  %v623_v52 = vadd.f32 %v1220_v50, %v398_v40  ;;  %v552_v53 = vpop.f32.mrb[3].mxu0  ;;  %v584_v54 = vpop.f32.mrb[3].mxu1  ;;  %1236 = vmatpush3.bf16.msra.mxu0 (!%p1068_p12), %v1367_v37  ;;  %1286 = vmatpush3.bf16.msra.mxu1 (!%p1068_p12), %v1367_v37 }
 0x133   : > { %628 = vst [vmem:[#allocation2] sm:$0xff] %v612_v47  ;;  %636 = vst [vmem:[#allocation2 + $0x40] sm:$0xff] %v620_v48  ;;  %v613_v55 = vadd.f32 %v552_v53, %v388_v45  ;;  %v621_v56 = vadd.f32 %v584_v54, %v396_v46  ;;  %1237 = vmatprep.subr.bf16.mxu0 (!%p1068_p12), %v1368_v38  ;;  %1279 = vmatprep.subr.bf16.mxu1 (!%p1068_p12), %v1368_v38 }
 0x134   : > { %631 = vst [vmem:[#allocation2 + $0x18] sm:$0xff] %v615_v51  ;;  %639 = vst [vmem:[#allocation2 + $0x58] sm:$0xff] %v623_v52 }
 0x135   : > { %629 = vst [vmem:[#allocation2 + $0x8] sm:$0xff] %v613_v55  ;;  %637 = vst [vmem:[#allocation2 + $0x48] sm:$0xff] %v621_v56  ;;  %v1369_v55 = vld [vmem:[%s1650_s3 + $0x38] sm:$0xff] (!%p1068_p12)  }
 0x136   : > { %1238 = vmatpush3.bf16.msra.mxu0 (!%p1068_p12), %v1368_v38  ;;  %1287 = vmatpush3.bf16.msra.mxu1 (!%p1068_p12), %v1368_v38 }
 0x137   : > { %v1215_v61 = vpop.f32.mrb[4].mxu0  ;;  %v1223_v62 = vpop.f32.mrb[4].mxu1  ;;  %647 = sbr.rel (%p1068_p12) target bundleno = 553 (0x229), region = 89  ;;  %1239 = vmatprep.subr.bf16.mxu0 (!%p1068_p12), %v1369_v55  ;;  %1280 = vmatprep.subr.bf16.mxu1 (!%p1068_p12), %v1369_v55 }
 0x138   : > { %v618_v1 = vadd.f32 %v1215_v61, %v393_v57  ;;  %v626_v2 = vadd.f32 %v1223_v62, %v401_v58  ;;  %v565_v3 = vpop.f32.mrb[5].mxu0  ;;  %v597_v4 = vpop.f32.mrb[5].mxu1 }
 0x139   : > { %v616_v7 = vadd.f32 %v565_v3, %v391_v59  ;;  %v624_v8 = vadd.f32 %v597_v4, %v399_v60  ;;  %v1216_v9 = vpop.f32.mrb[6].mxu0  ;;  %v1224_v10 = vpop.f32.mrb[6].mxu1  ;;  %v650_v39 = vld [vmem:[#allocation2 + $0x10] sm:$0xff] (!%p1068_p12) }
 0x13a   : > { %634 = vst [vmem:[#allocation2 + $0x30] sm:$0xff] %v618_v1  ;;  %642 = vst [vmem:[#allocation2 + $0x70] sm:$0xff] %v626_v2  ;;  %v619_v11 = vadd.f32 %v1216_v9, %v394_v63  ;;  %v627_v12 = vadd.f32 %v1224_v10, %v402_v0  ;;  %v568_v13 = vpop.f32.mrb[7].mxu0  ;;  %v600_v14 = vpop.f32.mrb[7].mxu1  ;;  %v648_v21 = vld [vmem:[#allocation2] sm:$0xff] (!%p1068_p12)  ;;  %v658_v41 = vld [vmem:[#allocation2 + $0x50] sm:$0xff] (!%p1068_p12)  ;;  %v673_v47 = vadd.f32 (!%p1068_p12), %v1585_v23, %v650_v39  ;;  %1240 = vmatpush3.bf16.msra.mxu0 (!%p1068_p12), %v1369_v55 }
 0x13b   : > { %632 = vst [vmem:[#allocation2 + $0x20] sm:$0xff] %v616_v7  ;;  %640 = vst [vmem:[#allocation2 + $0x60] sm:$0xff] %v624_v8  ;;  %v617_v15 = vadd.f32 %v568_v13, %v392_v5  ;;  %v625_v16 = vadd.f32 %v600_v14, %v400_v6  ;;  %v671_v24 = vadd.f32 (!%p1068_p12), %v1585_v23, %v648_v21  ;;  %v656_v26 = vld [vmem:[#allocation2 + $0x40] sm:$0xff] (!%p1068_p12)  ;;  %v651_v40 = vld [vmem:[#allocation2 + $0x18] sm:$0xff] (!%p1068_p12)  ;;  %1288 = vmatpush3.bf16.msra.mxu1 (!%p1068_p12), %v1369_v55 }
 0x13c   : > { %635 = vst [vmem:[#allocation2 + $0x38] sm:$0xff] %v619_v11  ;;  %643 = vst [vmem:[#allocation2 + $0x78] sm:$0xff] %v627_v12  ;;  %v649_v22 = vld [vmem:[#allocation2 + $0x8] sm:$0xff] (!%p1068_p12)  ;;  %v679_v28 = vadd.f32 (!%p1068_p12), %v1585_v23, %v656_v26  ;;  %v659_v42 = vld [vmem:[#allocation2 + $0x58] sm:$0xff] (!%p1068_p12)  ;;  %v674_v48 = vadd.f32 (!%p1068_p12), %v1585_v23, %v651_v40  ;;  %v681_v49 = vadd.f32 (!%p1068_p12), %v1585_v23, %v658_v41  ;;  %v689_v56 = vmax.f32 (!%p1068_p12), %v673_v47, 0.0 }
 0x13d   : > { %633 = vst [vmem:[#allocation2 + $0x28] sm:$0xff] %v617_v15  ;;  %641 = vst [vmem:[#allocation2 + $0x68] sm:$0xff] %v625_v16  ;;  %v672_v25 = vadd.f32 (!%p1068_p12), %v1585_v23, %v649_v22  ;;  %v657_v27 = vld [vmem:[#allocation2 + $0x48] sm:$0xff] (!%p1068_p12)  ;;  %v687_v30 = vmax.f32 (!%p1068_p12), %v671_v24, 0.0  ;;  %v682_v50 = vadd.f32 (!%p1068_p12), %v1585_v23, %v659_v42 }
 0x13e   : > { %v680_v29 = vadd.f32 %v1585_v23, %v657_v27  ;;  %v695_v33 = vmax.f32 %v679_v28, 0.0  ;;  %v690_v57 = vmax.f32 %v674_v48, 0.0  ;;  %v697_v58 = vmax.f32 %v681_v49, 0.0 }
 0x13f   : > { %v688_v31 = vmax.f32 %v672_v25, 0.0  ;;  %v698_v59 = vmax.f32 %v682_v50, 0.0 }
 0x140   : > { %v696_v34 = vmax.f32 %v680_v29, 0.0  ;;  %v704_v4 = vpack.c.bf16 %v690_v57, %v689_v56 }
 0x141   : > { %v703_v35 = vpack.c.bf16 %v688_v31, %v687_v30  ;;  %v654_v60 = vld [vmem:[#allocation2 + $0x30] sm:$0xff]  ;;  %v708_v6 = vpack.c.bf16 %v698_v59, %v697_v58 }
 0x142   : > { %v707_v36 = vpack.c.bf16 %v696_v34, %v695_v33  ;;  %v652_v43 = vld [vmem:[#allocation2 + $0x20] sm:$0xff]  ;;  %v662_v2 = vld [vmem:[#allocation2 + $0x70] sm:$0xff]  ;;  %v677_v5 = vadd.f32 %v1585_v23, %v654_v60 }
 0x143   : > { %1241 = vmatprep.mubr.bf16.mxu0 %v703_v35  ;;  %v660_v45 = vld [vmem:[#allocation2 + $0x60] sm:$0xff]  ;;  %v675_v51 = vadd.f32 %v1585_v23, %v652_v43  ;;  %v655_v61 = vld [vmem:[#allocation2 + $0x38] sm:$0xff]  ;;  %v685_v8 = vadd.f32 %v1585_v23, %v662_v2 }
 0x144   : > { %1249 = vmatprep.mubr.bf16.mxu1 %v707_v36  ;;  %v653_v44 = vld [vmem:[#allocation2 + $0x28] sm:$0xff]  ;;  %v683_v53 = vadd.f32 %v1585_v23, %v660_v45  ;;  %v663_v3 = vld [vmem:[#allocation2 + $0x78] sm:$0xff]  ;;  %v678_v7 = vadd.f32 %v1585_v23, %v655_v61  ;;  %1242 = vmatmul.mubr.bf16.vlgmr.msra.gmra.mrb[0].mxu0 %v704_v4  ;;  %v693_v12 = vmax.f32 %v677_v5, 0.0 }
 0x145   : > { %v661_v46 = vld [vmem:[#allocation2 + $0x68] sm:$0xff]  ;;  %v676_v52 = vadd.f32 %v1585_v23, %v653_v44  ;;  %v691_v62 = vmax.f32 %v675_v51, 0.0  ;;  %v686_v9 = vadd.f32 %v1585_v23, %v663_v3  ;;  %1250 = vmatmul.mubr.bf16.vlgmr.msra.gmra.mrb[0].mxu1 %v708_v6  ;;  %v701_v14 = vmax.f32 %v685_v8, 0.0 }
 0x146   : > { %v684_v54 = vadd.f32 %v1585_v23, %v661_v46  ;;  %v699_v0 = vmax.f32 %v683_v53, 0.0  ;;  %v694_v13 = vmax.f32 %v678_v7, 0.0 }
 0x147   : > { %v692_v63 = vmax.f32 %v676_v52, 0.0  ;;  %v702_v15 = vmax.f32 %v686_v9, 0.0 }
 0x148   : > { %v700_v1 = vmax.f32 %v684_v54, 0.0  ;;  %v706_v16 = vpack.c.bf16 %v694_v13, %v693_v12 }
 0x149   : > { %v705_v10 = vpack.c.bf16 %v692_v63, %v691_v62  ;;  %v710_v17 = vpack.c.bf16 %v702_v15, %v701_v14 }
 0x14a   : > { %v709_v11 = vpack.c.bf16 %v700_v1, %v699_v0 }
 0x14b   : > { %1245 = vmatprep.mubr.bf16.mxu0 %v705_v10 }
 0x14c   : > { %1253 = vmatprep.mubr.bf16.mxu1 %v709_v11  ;;  %1246 = vmatmul.mubr.bf16.gmra.mrb[4].mxu0 %v706_v16 }
 0x14d   : > { %1254 = vmatmul.mubr.bf16.gmra.mrb[4].mxu1 %v710_v17 }
 0x217   : > { %v1243_v18 = vpop.f32.mrb[0].mxu0 }
 0x218   : > { %v1251_v20 = vpop.f32.mrb[0].mxu1  ;;  %v816_v21 = vpop.f32.mrb[1].mxu0  ;;  %v825_v25 = vadd.f32 %v1243_v18, %v1070_v19 }
 0x219   : > { %v848_v22 = vpop.f32.mrb[1].mxu1  ;;  %v1244_v23 = vpop.f32.mrb[2].mxu0  ;;  %v857_v26 = vadd.f32 %v1251_v20, %v1070_v19  ;;  %v817_v31 = vadd.f32 %v1070_v19, %v816_v21 }
 0x21a   : > { %v1252_v24 = vpop.f32.mrb[2].mxu1  ;;  %v828_v27 = vadd.f32 %v1244_v23, %v1070_v19  ;;  %v819_v29 = vpop.f32.mrb[3].mxu0  ;;  %v849_v32 = vadd.f32 %v1070_v19, %v848_v22 }
 0x21b   : > { %v860_v28 = vadd.f32 %v1252_v24, %v1070_v19  ;;  %v851_v30 = vpop.f32.mrb[3].mxu1  ;;  %v820_v33 = vadd.f32 %v1070_v19, %v819_v29 }
 0x21c   : > { %v852_v34 = vadd.f32 %v1070_v19, %v851_v30  ;;  %v1122_v35 = vpack.c.bf16 %v828_v27, %v825_v25 }
 0x21d   : > { %v1142_v36 = vpack.c.bf16 %v860_v28, %v857_v26  ;;  %v1117_v37 = vpack.c.bf16 %v820_v33, %v817_v31 }
 0x21e   : > { %v1137_v38 = vpack.c.bf16 %v852_v34, %v849_v32  ;;  %1154 = vst [vmem:[%s1542_s7 + $0x8] sm:$0xff] %v1122_v35  }
 0x21f   : > { %1158 = vst [vmem:[%s1542_s7 + $0x28] sm:$0xff] %v1142_v36   ;;  %1118 = vst [vmem:[%s1542_s7] sm:$0xff] %v1117_v37   ;;  %v1247_v39 = vpop.f32.mrb[4].mxu0 }
 0x220   : > { %1157 = vst [vmem:[%s1542_s7 + $0x20] sm:$0xff] %v1137_v38   ;;  %v1255_v40 = vpop.f32.mrb[4].mxu1  ;;  %v832_v41 = vpop.f32.mrb[5].mxu0  ;;  %v841_v45 = vadd.f32 %v1247_v39, %v1070_v19 }
 0x221   : > { %v864_v42 = vpop.f32.mrb[5].mxu1  ;;  %v1248_v43 = vpop.f32.mrb[6].mxu0  ;;  %v873_v46 = vadd.f32 %v1255_v40, %v1070_v19  ;;  %v833_v51 = vadd.f32 %v1070_v19, %v832_v41 }
 0x222   : > { %v1256_v44 = vpop.f32.mrb[6].mxu1  ;;  %v844_v47 = vadd.f32 %v1248_v43, %v1070_v19  ;;  %v835_v49 = vpop.f32.mrb[7].mxu0  ;;  %v865_v52 = vadd.f32 %v1070_v19, %v864_v42 }
 0x223   : > { %v876_v48 = vadd.f32 %v1256_v44, %v1070_v19  ;;  %v867_v50 = vpop.f32.mrb[7].mxu1  ;;  %v836_v53 = vadd.f32 %v1070_v19, %v835_v49 }
 0x224   : > { %v868_v54 = vadd.f32 %v1070_v19, %v867_v50  ;;  %v1132_v55 = vpack.c.bf16 %v844_v47, %v841_v45 }
 0x225   : > { %v1152_v56 = vpack.c.bf16 %v876_v48, %v873_v46  ;;  %v1127_v57 = vpack.c.bf16 %v836_v53, %v833_v51 }
 0x226   : > { %v1147_v58 = vpack.c.bf16 %v868_v54, %v865_v52  ;;  %1156 = vst [vmem:[%s1542_s7 + $0x18] sm:$0xff] %v1132_v55  }
 0x227   : > { %1160 = vst [vmem:[%s1542_s7 + $0x38] sm:$0xff] %v1152_v56   ;;  %1155 = vst [vmem:[%s1542_s7 + $0x10] sm:$0xff] %v1127_v57  }
 0x228   : > { %1159 = vst [vmem:[%s1542_s7 + $0x30] sm:$0xff] %v1147_v58  }
 0x229 PF: > { %s15_s24 = sadd.s32 1, %s1424_s24   ;;  %s1653_s18 = smov %s1404_s19 }
 0x22a   : > { %p12_p13 = scmp.ge.s32.totalorder %s15_s24, 6   ;;  %s1654_s19 = smov %s1508_s6 }
 0x22b   : > { %s1655_s20 = smov %s1416_s22  ;;  %s1656_s21 = smov %s1420_s23 }
 0x22c   : > { %s1657_s22 = smov %s1660_s25  ;;  %s1658_s23 = smov %s1664_s26 }
 0x22d   :  { %14 = sbr.rel (!%p12_p13) target bundleno = 4 (0x4), region = 125 }

// kernel: gcn_forward.5
= control target key start
LH: loop header
LB: loop body
LE: loop exit
PB: predicated region body
PF: predicated region fallthrough
CT: control target
= control target key end

     0   :  { %s1298_s18 = smov 0   ;;  %s1300_s19 = smov 0   ;;  %s1496_s0 = inlined_call_operand.vmem [shape: bf16[256,256], index: 0, kind: input, shape index: {}]   ;;  %s1497_s1 = inlined_call_operand.vmem [shape: bf16[256,128], index: 1, kind: input, shape index: {}]   ;;  %s1498_s2 = inlined_call_operand.vmem [shape: f32[1,128], index: 2, kind: input, shape index: {}]   ;;  %s1499_s3 = inlined_call_operand.vmem [shape: bf16[128,128], index: 3, kind: input, shape index: {}]   ;;  %s1500_s4 = inlined_call_operand.vmem [shape: f32[1,128], index: 4, kind: input, shape index: {}]   ;;  %s1501_s5 = inlined_call_operand.vmem [shape: f32[256,128], index: 5, kind: output, shape index: {}]  }
   0x1   :  { %s1302_s20 = smov 0   ;;  %s1304_s21 = smov 0  }
   0x2   :  { %s1306_s22 = smov 0   ;;  %s1308_s23 = smov 0  }
   0x3   :  { %s1310_s24 = smov 0  }
   0x4 LB: > { %s24_s25 = sadd.s32 1, %s1257_s22  ;;  %s27_s26 = sadd.s32 1, %s1261_s23  ;;  %s1265_s24 = sphi %s1310_s24, %s15_s24   ;;  %s1261_s23 = sphi %s1308_s23, %s1507_s23   ;;  %s1257_s22 = sphi %s1306_s22, %s1506_s22   ;;  %s1253_s21 = sphi %s1304_s21, %s1505_s21   ;;  %s1249_s20 = sphi %s1302_s20, %s1504_s20   ;;  %s1245_s19 = sphi %s1300_s19, %s1503_s19   ;;  %s1241_s18 = sphi %s1298_s18, %s1502_s18  }
   0x5   : > { %p25_p0 = scmp.ge.s32.totalorder %s24_s25, 2  ;;  %p43_p1 = scmp.ne.s32.totalorder %s1245_s19, %s1241_s18 }
   0x6   : > { %p44_p2 = scmp.eq.s32.totalorder %s1265_s24, 0  ;;  %s36_s30 = sadd.s32 1, %s1245_s19 }
   0x7   : > { %s1509_s25 = smov (%p25_p0, %s24_s25), 0  ;;  %s1511_s26 = smov (!%p25_p0, %s27_s26), %s1261_s23 }
   0x8   : > { %p45_p3 = por %p44_p2, %p43_p1  ;;  %p29_p4 = scmp.ge.s32.totalorder %s1511_s26, 2 }
   0x9   : > { %s32_s27 = ssub.s32 %s1257_s22, %s1509_s25  ;;  %p960_p6 = scmp.ge.s32.totalorder %s1265_s24, 4 }
   0xa   : > { %s1513_s26 = smov (%p29_p4, %s1511_s26), 0 }
   0xb   : > { %s31_s28 = ssub.s32 %s1261_s23, %s1513_s26  ;;  %191 = sbr.rel (%p960_p6) target bundleno = 34 (0x22), region = 32 }
   0xc   : > { %s33_s29 = sor.u32 %s32_s27, %s31_s28 }
   0xd   : > { %p34_p5 = scmp.eq.s32.totalorder %s33_s29, 0 }
   0xf   : > { %s1349_s6 = scalar_select %p34_p5, %s1245_s19, %s36_s30  }
  0x12   : > { %194 = sbr.rel (!%p45_p3) target bundleno = 34 (0x22), region = 36  ;;  %s196_s7 = sand.u32 (%p45_p3), 1, %s1245_s19  }
  0x13   : > { %s1001_s8 = sshll.u32 (%p45_p3), %s1261_s23, 5  ;;  %s961_s9 = sshll.u32 (%p45_p3), %s196_s7, 6 }
  0x14   : > { %s201_s10 = sadd.s32 (%p45_p3), %s1257_s22, %s1001_s8  ;;  %s198_s15 = scalar_lea.vmem (%p45_p3), [#allocation3], %s961_s9 }
  0x15   : > { %s964_s11 = sshll.u32 (%p45_p3), %s201_s10, 2 }
  0x16   : > { %s1358_s14 = scalar_lea.vmem (%p45_p3), %s1496_s0, %s964_s11 }
  0x17   : > { %v219_v0 = vld [vmem:[%s1358_s14] sm:$0xf] (%p45_p3)  ;;  %v221_v1 = vld [vmem:[%s1358_s14 + $0x8] sm:$0xf] (%p45_p3)  ;;  %v223_v2 = vld [vmem:[%s1358_s14 + $0x10] sm:$0xf] (%p45_p3) }
  0x18   : > { %220 = vst [vmem:[%s198_s15] sm:$0xf] (%p45_p3), %v219_v0  ;;  %222 = vst [vmem:[%s198_s15 + $0x4] sm:$0xf] (%p45_p3), %v221_v1  ;;  %v225_v3 = vld [vmem:[%s1358_s14 + $0x18] sm:$0xf] (%p45_p3) }
  0x19   : > { %224 = vst [vmem:[%s198_s15 + $0x8] sm:$0xf] %v223_v2  ;;  %v227_v4 = vld [vmem:[%s1358_s14 + $0x20] sm:$0xf]  ;;  %v229_v5 = vld [vmem:[%s1358_s14 + $0x28] sm:$0xf] }
  0x1a   : > { %226 = vst [vmem:[%s198_s15 + $0xc] sm:$0xf] %v225_v3  ;;  %228 = vst [vmem:[%s198_s15 + $0x10] sm:$0xf] %v227_v4  ;;  %v231_v6 = vld [vmem:[%s1358_s14 + $0x30] sm:$0xf] }
  0x1b   : > { %230 = vst [vmem:[%s198_s15 + $0x14] sm:$0xf] %v229_v5  ;;  %v233_v7 = vld [vmem:[%s1358_s14 + $0x38] sm:$0xf]  ;;  %v235_v8 = vld [vmem:[%s1358_s14 + $0x40] sm:$0xf] }
  0x1c   : > { %232 = vst [vmem:[%s198_s15 + $0x18] sm:$0xf] %v231_v6  ;;  %234 = vst [vmem:[%s198_s15 + $0x1c] sm:$0xf] %v233_v7  ;;  %v237_v9 = vld [vmem:[%s1358_s14 + $0x48] sm:$0xf] }
  0x1d   : > { %236 = vst [vmem:[%s198_s15 + $0x20] sm:$0xf] %v235_v8  ;;  %v239_v10 = vld [vmem:[%s1358_s14 + $0x50] sm:$0xf]  ;;  %v241_v11 = vld [vmem:[%s1358_s14 + $0x58] sm:$0xf] }
  0x1e   : > { %238 = vst [vmem:[%s198_s15 + $0x24] sm:$0xf] %v237_v9  ;;  %240 = vst [vmem:[%s198_s15 + $0x28] sm:$0xf] %v239_v10  ;;  %v243_v12 = vld [vmem:[%s1358_s14 + $0x60] sm:$0xf] }
  0x1f   : > { %242 = vst [vmem:[%s198_s15 + $0x2c] sm:$0xf] %v241_v11  ;;  %v245_v13 = vld [vmem:[%s1358_s14 + $0x68] sm:$0xf]  ;;  %v247_v14 = vld [vmem:[%s1358_s14 + $0x70] sm:$0xf] }
  0x20   : > { %244 = vst [vmem:[%s198_s15 + $0x30] sm:$0xf] %v243_v12  ;;  %246 = vst [vmem:[%s198_s15 + $0x34] sm:$0xf] %v245_v13  ;;  %v249_v15 = vld [vmem:[%s1358_s14 + $0x78] sm:$0xf] }
  0x21   : > { %248 = vst [vmem:[%s198_s15 + $0x38] sm:$0xf] %v247_v14  ;;  %250 = vst [vmem:[%s198_s15 + $0x3c] sm:$0xf] %v249_v15 }
  0x22 PF: > { %p965_p7 = scmp.ge.s32.totalorder %s1265_s24, 1  ;;  %p304_p8 = scmp.lt.s32.totalorder %s1265_s24, 5 }
  0x24   : > { %p305_p9 = pnand %p965_p7, %p304_p8 }
  0x25   : > { %s311_s16 = sand.u32 (!%p305_p9), 1, %s1241_s18   ;;  %s967_s17 = sshll.u32 (!%p305_p9), %s1253_s21, 4 }
  0x26   : > { %308 = sbr.rel (%p305_p9) target bundleno = 549 (0x225), region = 77  ;;  %s966_s27 = sshll.u32 (!%p305_p9), %s311_s16, 6 }
  0x27   : > { %p340_p10 = scmp.lt.s32.totalorder (!%p305_p9), %s967_s17, 31  ;;  %s1385_s8 = scalar_lea.vmem (!%p305_p9), [#allocation3], %s966_s27 }
  0x28   : > { %p969_p11 = scmp.ne.s32.totalorder (!%p305_p9), %s1249_s20, 0 }
  0x2d   : > { %s1515_s17 = smov (!%p340_p10, %s967_s17), 31  ;;  %349 = sbr.rel (%p969_p11) target bundleno = 55 (0x37), region = 85 }
  0x2e   : > { %s968_s28 = sshll.u32 %s1515_s17, 3  ;;  %v1267_v16 = vmov (!%p969_p11), 0.0  }
  0x2f   : > { %s1383_s7 = scalar_lea.vmem %s1501_s5, %s968_s28  ;;  %350 = vst [vmem:[#allocation2] sm:$0xff] (!%p969_p11), %v1267_v16  ;;  %351 = vst [vmem:[#allocation2 + $0x8] sm:$0xff] (!%p969_p11), %v1267_v16 }
  0x30   : > { %352 = vst [vmem:[#allocation2 + $0x10] sm:$0xff] (!%p969_p11), %v1267_v16  ;;  %353 = vst [vmem:[#allocation2 + $0x18] sm:$0xff] (!%p969_p11), %v1267_v16 }
  0x31   : > { %354 = vst [vmem:[#allocation2 + $0x20] sm:$0xff] (!%p969_p11), %v1267_v16  ;;  %355 = vst [vmem:[#allocation2 + $0x28] sm:$0xff] (!%p969_p11), %v1267_v16 }
  0x32   : > { %356 = vst [vmem:[#allocation2 + $0x30] sm:$0xff] (!%p969_p11), %v1267_v16  ;;  %357 = vst [vmem:[#allocation2 + $0x38] sm:$0xff] (!%p969_p11), %v1267_v16 }
  0x33   : > { %358 = vst [vmem:[#allocation2 + $0x40] sm:$0xff] (!%p969_p11), %v1267_v16  ;;  %359 = vst [vmem:[#allocation2 + $0x48] sm:$0xff] (!%p969_p11), %v1267_v16 }
  0x34   : > { %360 = vst [vmem:[#allocation2 + $0x50] sm:$0xff] %v1267_v16  ;;  %361 = vst [vmem:[#allocation2 + $0x58] sm:$0xff] %v1267_v16 }
  0x35   : > { %362 = vst [vmem:[#allocation2 + $0x60] sm:$0xff] %v1267_v16  ;;  %363 = vst [vmem:[#allocation2 + $0x68] sm:$0xff] %v1267_v16 }
  0x36   : > { %364 = vst [vmem:[#allocation2 + $0x70] sm:$0xff] %v1267_v16  ;;  %365 = vst [vmem:[#allocation2 + $0x78] sm:$0xff] %v1267_v16 }
  0x37 PF: > { %s970_s18 = sshll.u32 %s1249_s20, 7  ;;  %v1195_v17 = vld [vmem:[%s1385_s8] sm:$0xff]   ;;  %v1197_v27 = vld [vmem:[%s1385_s8 + $0x8] sm:$0xff]   ;;  %v1199_v29 = vld [vmem:[%s1385_s8 + $0x10] sm:$0xff]   ;;  %p988_p12 = scmp.ne.s32.totalorder %s1249_s20, 1 }
  0x38   : > { %s367_s21 = sshra.s32 %s970_s18, 3  ;;  %v1196_v18 = vld [vmem:[%s1385_s8 + $0x20] sm:$0xff]   ;;  %1050 = vmatprep.mubr.bf16.mxu0 %v1195_v17  ;;  %v1198_v28 = vld [vmem:[%s1385_s8 + $0x28] sm:$0xff]   ;;  %v1200_v30 = vld [vmem:[%s1385_s8 + $0x30] sm:$0xff]  }
  0x39   : > { %s971_s9 = sshll.u32 %s367_s21, 2  ;;  %1058 = vmatprep.mubr.bf16.mxu1 %v1196_v18  ;;  %v1201_v31 = vld [vmem:[%s1385_s8 + $0x18] sm:$0xff]   ;;  %v387_v35 = vld [vmem:[#allocation2] sm:$0xff]  ;;  %v388_v45 = vld [vmem:[#allocation2 + $0x8] sm:$0xff] }
  0x3a   : > { %s1394_s12 = scalar_lea.vmem %s1497_s1, %s971_s9  ;;  %v1202_v32 = vld [vmem:[%s1385_s8 + $0x38] sm:$0xff]   ;;  %v389_v33 = vld [vmem:[#allocation2 + $0x10] sm:$0xff]  ;;  %v1203_v17 = vld [vmem:[%s1499_s3] sm:$0xff] (!%p988_p12)  }
  0x3b   : > { %v1187_v19 = vld [vmem:[%s1394_s12] sm:$0xff]   ;;  %v1188_v20 = vld [vmem:[%s1394_s12 + $0x8] sm:$0xff]   ;;  %v1189_v21 = vld [vmem:[%s1394_s12 + $0x10] sm:$0xff]  }
  0x3c   : > { %1034 = vmatprep.subr.bf16.mxu0 %v1187_v19  ;;  %1098 = vmatprep.subr.bf16.mxu1 %v1187_v19  ;;  %v1190_v22 = vld [vmem:[%s1394_s12 + $0x18] sm:$0xff]   ;;  %v1191_v23 = vld [vmem:[%s1394_s12 + $0x20] sm:$0xff]   ;;  %v1192_v24 = vld [vmem:[%s1394_s12 + $0x28] sm:$0xff]  }
  0x3d   : > { %1035 = vmatpush3.bf16.msra.mxu0 %v1187_v19  ;;  %1106 = vmatpush3.bf16.msra.mxu1 %v1187_v19  ;;  %v1193_v25 = vld [vmem:[%s1394_s12 + $0x30] sm:$0xff]   ;;  %v1194_v26 = vld [vmem:[%s1394_s12 + $0x38] sm:$0xff]   ;;  %v395_v36 = vld [vmem:[#allocation2 + $0x40] sm:$0xff] }
  0x3e   : > { %1036 = vmatprep.subr.bf16.mxu0 %v1188_v20  ;;  %1099 = vmatprep.subr.bf16.mxu1 %v1188_v20  ;;  %v397_v34 = vld [vmem:[#allocation2 + $0x50] sm:$0xff]  ;;  %v390_v39 = vld [vmem:[#allocation2 + $0x18] sm:$0xff]  ;;  %v396_v46 = vld [vmem:[#allocation2 + $0x48] sm:$0xff] }
  0x3f   : > { %v398_v40 = vld [vmem:[#allocation2 + $0x58] sm:$0xff]  ;;  %v393_v57 = vld [vmem:[#allocation2 + $0x30] sm:$0xff]  ;;  %v391_v59 = vld [vmem:[#allocation2 + $0x20] sm:$0xff] }
  0x40   : > { %v401_v58 = vld [vmem:[#allocation2 + $0x70] sm:$0xff]  ;;  %v399_v60 = vld [vmem:[#allocation2 + $0x60] sm:$0xff]  ;;  %v394_v63 = vld [vmem:[#allocation2 + $0x38] sm:$0xff] }
  0x41   : > { %1037 = vmatpush3.bf16.msra.mxu0 %v1188_v20  ;;  %1107 = vmatpush3.bf16.msra.mxu1 %v1188_v20  ;;  %v402_v0 = vld [vmem:[#allocation2 + $0x78] sm:$0xff]  ;;  %v392_v5 = vld [vmem:[#allocation2 + $0x28] sm:$0xff]  ;;  %v1205_v19 = vld [vmem:[%s1499_s3 + $0x10] sm:$0xff] (!%p988_p12)  }
  0x42   : > { %1038 = vmatprep.subr.bf16.mxu0 %v1189_v21  ;;  %1100 = vmatprep.subr.bf16.mxu1 %v1189_v21  ;;  %v400_v6 = vld [vmem:[#allocation2 + $0x68] sm:$0xff]  ;;  %v1206_v20 = vld [vmem:[%s1499_s3 + $0x18] sm:$0xff] (!%p988_p12)  }
  0x43   : > { %v1204_v18 = vld [vmem:[%s1499_s3 + $0x8] sm:$0xff] (!%p988_p12)  }
  0x45   : > { %1039 = vmatpush3.bf16.msra.mxu0 %v1189_v21  ;;  %1108 = vmatpush3.bf16.msra.mxu1 %v1189_v21 }
  0x46   : > { %1040 = vmatprep.subr.bf16.mxu0 %v1190_v22  ;;  %1101 = vmatprep.subr.bf16.mxu1 %v1190_v22 }
  0x49   : > { %1041 = vmatpush3.bf16.msra.mxu0 %v1190_v22  ;;  %1109 = vmatpush3.bf16.msra.mxu1 %v1190_v22 }
  0x4a   : > { %1042 = vmatprep.subr.bf16.mxu0 %v1191_v23  ;;  %1102 = vmatprep.subr.bf16.mxu1 %v1191_v23 }
  0x4d   : > { %1043 = vmatpush3.bf16.msra.mxu0 %v1191_v23  ;;  %1110 = vmatpush3.bf16.msra.mxu1 %v1191_v23  ;;  %v1426_v23 = vld [vmem:[%s1498_s2] ss:$0 sm:$0xff] (!%p988_p12) }
  0x4e   : > { %1044 = vmatprep.subr.bf16.mxu0 %v1192_v24  ;;  %1103 = vmatprep.subr.bf16.mxu1 %v1192_v24 }
  0x51   : > { %1045 = vmatpush3.bf16.msra.mxu0 %v1192_v24  ;;  %1111 = vmatpush3.bf16.msra.mxu1 %v1192_v24 }
  0x52   : > { %1046 = vmatprep.subr.bf16.mxu0 %v1193_v25  ;;  %1104 = vmatprep.subr.bf16.mxu1 %v1193_v25 }
  0x55   : > { %1047 = vmatpush3.bf16.msra.mxu0 %v1193_v25  ;;  %1112 = vmatpush3.bf16.msra.mxu1 %v1193_v25 }
  0x56   : > { %1048 = vmatprep.subr.bf16.mxu0 %v1194_v26  ;;  %1105 = vmatprep.subr.bf16.mxu1 %v1194_v26 }
  0x59   : > { %1049 = vmatpush3.bf16.msra.mxu0 %v1194_v26  ;;  %1113 = vmatpush3.bf16.msra.mxu1 %v1194_v26 }
  0x5a   : > { %1066 = vmatprep.subr.bf16.mxu0 (!%p988_p12), %v1203_v17  ;;  %1114 = vmatprep.subr.bf16.mxu1 (!%p988_p12), %v1203_v17 }
  0x5c   : > { %1051 = vmatmul.mubr.bf16.vlgmr.msra.gmra.mrb[0].mxu0 %v1197_v27  ;;  %1059 = vmatmul.mubr.bf16.vlgmr.msra.gmra.mrb[0].mxu1 %v1198_v28 }
  0x5d   : > { %1054 = vmatprep.mubr.bf16.mxu0 %v1199_v29  ;;  %1062 = vmatprep.mubr.bf16.mxu1 %v1200_v30 }
  0x5e   : > { %1067 = vmatpush3.bf16.msra.mxu0 (!%p988_p12), %v1203_v17  ;;  %1122 = vmatpush3.bf16.msra.mxu1 (!%p988_p12), %v1203_v17 }
  0x5f   : > { %1068 = vmatprep.subr.bf16.mxu0 (!%p988_p12), %v1204_v18  ;;  %1115 = vmatprep.subr.bf16.mxu1 (!%p988_p12), %v1204_v18 }
  0x62   : > { %1069 = vmatpush3.bf16.msra.mxu0 (!%p988_p12), %v1204_v18  ;;  %1123 = vmatpush3.bf16.msra.mxu1 (!%p988_p12), %v1204_v18 }
  0x63   : > { %1070 = vmatprep.subr.bf16.mxu0 (!%p988_p12), %v1205_v19  ;;  %1116 = vmatprep.subr.bf16.mxu1 (!%p988_p12), %v1205_v19 }
  0x64   : > { %1055 = vmatmul.mubr.bf16.gmra.mrb[4].mxu0 %v1201_v31  ;;  %1063 = vmatmul.mubr.bf16.gmra.mrb[4].mxu1 %v1202_v32  ;;  %v1207_v31 = vld [vmem:[%s1499_s3 + $0x20] sm:$0xff] (!%p988_p12)  }
  0x66   : > { %1071 = vmatpush3.bf16.msra.mxu0 (!%p988_p12), %v1205_v19  ;;  %1124 = vmatpush3.bf16.msra.mxu1 (!%p988_p12), %v1205_v19 }
  0x67   : > { %1072 = vmatprep.subr.bf16.mxu0 (!%p988_p12), %v1206_v20  ;;  %1117 = vmatprep.subr.bf16.mxu1 (!%p988_p12), %v1206_v20 }
  0x6a   : > { %1073 = vmatpush3.bf16.msra.mxu0 (!%p988_p12), %v1206_v20  ;;  %1125 = vmatpush3.bf16.msra.mxu1 (!%p988_p12), %v1206_v20 }
  0x6b   : > { %1074 = vmatprep.subr.bf16.mxu0 (!%p988_p12), %v1207_v31  ;;  %1118 = vmatprep.subr.bf16.mxu1 (!%p988_p12), %v1207_v31 }
  0x6e   : > { %1075 = vmatpush3.bf16.msra.mxu0 (!%p988_p12), %v1207_v31  ;;  %1126 = vmatpush3.bf16.msra.mxu1 (!%p988_p12), %v1207_v31 }
 0x12f   : > { %v1052_v37 = vpop.f32.mrb[0].mxu0  ;;  %v1060_v38 = vpop.f32.mrb[0].mxu1 }
 0x130   : > { %v614_v41 = vadd.f32 %v1052_v37, %v389_v33  ;;  %v622_v42 = vadd.f32 %v1060_v38, %v397_v34  ;;  %v549_v43 = vpop.f32.mrb[1].mxu0  ;;  %v581_v44 = vpop.f32.mrb[1].mxu1  ;;  %v1208_v33 = vld [vmem:[%s1499_s3 + $0x28] sm:$0xff] (!%p988_p12)   ;;  %v1209_v34 = vld [vmem:[%s1499_s3 + $0x30] sm:$0xff] (!%p988_p12)  }
 0x131   : > { %v612_v47 = vadd.f32 %v549_v43, %v387_v35  ;;  %v620_v48 = vadd.f32 %v581_v44, %v395_v36  ;;  %v1053_v49 = vpop.f32.mrb[2].mxu0  ;;  %v1061_v50 = vpop.f32.mrb[2].mxu1  ;;  %1076 = vmatprep.subr.bf16.mxu0 (!%p988_p12), %v1208_v33  ;;  %1119 = vmatprep.subr.bf16.mxu1 (!%p988_p12), %v1208_v33  ;;  %v1210_v35 = vld [vmem:[%s1499_s3 + $0x38] sm:$0xff] (!%p988_p12)  }
 0x132   : > { %630 = vst [vmem:[#allocation2 + $0x10] sm:$0xff] %v614_v41  ;;  %638 = vst [vmem:[#allocation2 + $0x50] sm:$0xff] %v622_v42  ;;  %v615_v51 = vadd.f32 %v1053_v49, %v390_v39  ;;  %v623_v52 = vadd.f32 %v1061_v50, %v398_v40  ;;  %v552_v53 = vpop.f32.mrb[3].mxu0  ;;  %v584_v54 = vpop.f32.mrb[3].mxu1  ;;  %1077 = vmatpush3.bf16.msra.mxu0 (!%p988_p12), %v1208_v33  ;;  %1127 = vmatpush3.bf16.msra.mxu1 (!%p988_p12), %v1208_v33 }
 0x133   : > { %628 = vst [vmem:[#allocation2] sm:$0xff] %v612_v47  ;;  %636 = vst [vmem:[#allocation2 + $0x40] sm:$0xff] %v620_v48  ;;  %v613_v55 = vadd.f32 %v552_v53, %v388_v45  ;;  %v621_v56 = vadd.f32 %v584_v54, %v396_v46  ;;  %1078 = vmatprep.subr.bf16.mxu0 (!%p988_p12), %v1209_v34  ;;  %1120 = vmatprep.subr.bf16.mxu1 (!%p988_p12), %v1209_v34 }
 0x134   : > { %631 = vst [vmem:[#allocation2 + $0x18] sm:$0xff] %v615_v51  ;;  %639 = vst [vmem:[#allocation2 + $0x58] sm:$0xff] %v623_v52 }
 0x135   : > { %629 = vst [vmem:[#allocation2 + $0x8] sm:$0xff] %v613_v55  ;;  %637 = vst [vmem:[#allocation2 + $0x48] sm:$0xff] %v621_v56 }
 0x136   : > { %1079 = vmatpush3.bf16.msra.mxu0 (!%p988_p12), %v1209_v34  ;;  %1128 = vmatpush3.bf16.msra.mxu1 (!%p988_p12), %v1209_v34 }
 0x137   : > { %v1056_v61 = vpop.f32.mrb[4].mxu0  ;;  %v1064_v62 = vpop.f32.mrb[4].mxu1  ;;  %647 = sbr.rel (%p988_p12) target bundleno = 549 (0x225), region = 89  ;;  %1080 = vmatprep.subr.bf16.mxu0 (!%p988_p12), %v1210_v35  ;;  %1121 = vmatprep.subr.bf16.mxu1 (!%p988_p12), %v1210_v35 }
 0x138   : > { %v618_v1 = vadd.f32 %v1056_v61, %v393_v57  ;;  %v626_v2 = vadd.f32 %v1064_v62, %v401_v58  ;;  %v565_v3 = vpop.f32.mrb[5].mxu0  ;;  %v597_v4 = vpop.f32.mrb[5].mxu1 }
 0x139   : > { %v616_v7 = vadd.f32 %v565_v3, %v391_v59  ;;  %v624_v8 = vadd.f32 %v597_v4, %v399_v60  ;;  %v1057_v9 = vpop.f32.mrb[6].mxu0  ;;  %v1065_v10 = vpop.f32.mrb[6].mxu1  ;;  %v650_v36 = vld [vmem:[#allocation2 + $0x10] sm:$0xff] (!%p988_p12) }
 0x13a   : > { %634 = vst [vmem:[#allocation2 + $0x30] sm:$0xff] %v618_v1  ;;  %642 = vst [vmem:[#allocation2 + $0x70] sm:$0xff] %v626_v2  ;;  %v619_v11 = vadd.f32 %v1057_v9, %v394_v63  ;;  %v627_v12 = vadd.f32 %v1065_v10, %v402_v0  ;;  %v568_v13 = vpop.f32.mrb[7].mxu0  ;;  %v600_v14 = vpop.f32.mrb[7].mxu1  ;;  %v648_v21 = vld [vmem:[#allocation2] sm:$0xff] (!%p988_p12)  ;;  %v658_v38 = vld [vmem:[#allocation2 + $0x50] sm:$0xff] (!%p988_p12)  ;;  %v673_v44 = vadd.f32 (!%p988_p12), %v1426_v23, %v650_v36  ;;  %1081 = vmatpush3.bf16.msra.mxu0 (!%p988_p12), %v1210_v35 }
 0x13b   : > { %632 = vst [vmem:[#allocation2 + $0x20] sm:$0xff] %v616_v7  ;;  %640 = vst [vmem:[#allocation2 + $0x60] sm:$0xff] %v624_v8  ;;  %v617_v15 = vadd.f32 %v568_v13, %v392_v5  ;;  %v625_v16 = vadd.f32 %v600_v14, %v400_v6  ;;  %v671_v24 = vadd.f32 (!%p988_p12), %v1426_v23, %v648_v21  ;;  %v656_v26 = vld [vmem:[#allocation2 + $0x40] sm:$0xff] (!%p988_p12)  ;;  %v651_v37 = vld [vmem:[#allocation2 + $0x18] sm:$0xff] (!%p988_p12)  ;;  %1129 = vmatpush3.bf16.msra.mxu1 (!%p988_p12), %v1210_v35 }
 0x13c   : > { %635 = vst [vmem:[#allocation2 + $0x38] sm:$0xff] %v619_v11  ;;  %643 = vst [vmem:[#allocation2 + $0x78] sm:$0xff] %v627_v12  ;;  %v649_v22 = vld [vmem:[#allocation2 + $0x8] sm:$0xff] (!%p988_p12)  ;;  %v679_v28 = vadd.f32 (!%p988_p12), %v1426_v23, %v656_v26  ;;  %v659_v39 = vld [vmem:[#allocation2 + $0x58] sm:$0xff] (!%p988_p12)  ;;  %v674_v45 = vadd.f32 (!%p988_p12), %v1426_v23, %v651_v37  ;;  %v681_v46 = vadd.f32 (!%p988_p12), %v1426_v23, %v658_v38 }
 0x13d   : > { %633 = vst [vmem:[#allocation2 + $0x28] sm:$0xff] %v617_v15  ;;  %641 = vst [vmem:[#allocation2 + $0x68] sm:$0xff] %v625_v16  ;;  %v672_v25 = vadd.f32 (!%p988_p12), %v1426_v23, %v649_v22  ;;  %v657_v27 = vld [vmem:[#allocation2 + $0x48] sm:$0xff] (!%p988_p12)  ;;  %v682_v47 = vadd.f32 (!%p988_p12), %v1426_v23, %v659_v39  ;;  %v990_v2 = vld [vmem:[%s1500_s4] ss:$0 sm:$0xff] (!%p988_p12) }
 0x13e   : > { %v680_v29 = vadd.f32 %v1426_v23, %v657_v27  ;;  %v688_v52 = vpack.c.bf16 %v674_v45, %v673_v44 }
 0x13f   : > { %v687_v30 = vpack.c.bf16 %v672_v25, %v671_v24  ;;  %v692_v53 = vpack.c.bf16 %v682_v47, %v681_v46 }
 0x140   : > { %v691_v32 = vpack.c.bf16 %v680_v29, %v679_v28 }
 0x141   : > { %1082 = vmatprep.mubr.bf16.mxu0 %v687_v30  ;;  %v654_v54 = vld [vmem:[#allocation2 + $0x30] sm:$0xff] }
 0x142   : > { %1090 = vmatprep.mubr.bf16.mxu1 %v691_v32  ;;  %v652_v40 = vld [vmem:[#allocation2 + $0x20] sm:$0xff]  ;;  %v662_v58 = vld [vmem:[#allocation2 + $0x70] sm:$0xff]  ;;  %v677_v60 = vadd.f32 %v1426_v23, %v654_v54  ;;  %1083 = vmatmul.mubr.bf16.vlgmr.msra.gmra.mrb[0].mxu0 %v688_v52 }
 0x143   : > { %v660_v42 = vld [vmem:[#allocation2 + $0x60] sm:$0xff]  ;;  %v675_v48 = vadd.f32 %v1426_v23, %v652_v40  ;;  %v655_v57 = vld [vmem:[#allocation2 + $0x38] sm:$0xff]  ;;  %1091 = vmatmul.mubr.bf16.vlgmr.msra.gmra.mrb[0].mxu1 %v692_v53  ;;  %v685_v62 = vadd.f32 %v1426_v23, %v662_v58 }
 0x144   : > { %v653_v41 = vld [vmem:[#allocation2 + $0x28] sm:$0xff]  ;;  %v683_v50 = vadd.f32 %v1426_v23, %v660_v42  ;;  %v663_v59 = vld [vmem:[#allocation2 + $0x78] sm:$0xff]  ;;  %v678_v61 = vadd.f32 %v1426_v23, %v655_v57 }
 0x145   : > { %v661_v43 = vld [vmem:[#allocation2 + $0x68] sm:$0xff]  ;;  %v676_v49 = vadd.f32 %v1426_v23, %v653_v41  ;;  %v686_v63 = vadd.f32 %v1426_v23, %v663_v59 }
 0x146   : > { %v684_v51 = vadd.f32 %v1426_v23, %v661_v43  ;;  %v690_v0 = vpack.c.bf16 %v678_v61, %v677_v60 }
 0x147   : > { %v689_v55 = vpack.c.bf16 %v676_v49, %v675_v48  ;;  %v694_v1 = vpack.c.bf16 %v686_v63, %v685_v62 }
 0x148   : > { %v693_v56 = vpack.c.bf16 %v684_v51, %v683_v50 }
 0x149   : > { %1086 = vmatprep.mubr.bf16.mxu0 %v689_v55 }
 0x14a   : > { %1094 = vmatprep.mubr.bf16.mxu1 %v693_v56  ;;  %1087 = vmatmul.mubr.bf16.gmra.mrb[4].mxu0 %v690_v0 }
 0x14b   : > { %1095 = vmatmul.mubr.bf16.gmra.mrb[4].mxu1 %v694_v1 }
 0x215   : > { %v1084_v3 = vpop.f32.mrb[0].mxu0 }
 0x216   : > { %v1092_v4 = vpop.f32.mrb[0].mxu1  ;;  %v809_v5 = vadd.f32 %v1084_v3, %v990_v2  ;;  %v800_v7 = vpop.f32.mrb[1].mxu0 }
 0x217   : > { %v841_v6 = vadd.f32 %v1092_v4, %v990_v2  ;;  %v832_v8 = vpop.f32.mrb[1].mxu1  ;;  %v801_v9 = vadd.f32 %v990_v2, %v800_v7  ;;  %v1085_v11 = vpop.f32.mrb[2].mxu0 }
 0x218   : > { %v833_v10 = vadd.f32 %v990_v2, %v832_v8  ;;  %v1093_v12 = vpop.f32.mrb[2].mxu1  ;;  %865 = vst [vmem:[%s1383_s7 + $0x10] sm:$0xff] %v809_v5  ;;  %v812_v13 = vadd.f32 %v1085_v11, %v990_v2  ;;  %v803_v15 = vpop.f32.mrb[3].mxu0 }
 0x219   : > { %873 = vst [vmem:[%s1383_s7 + $0x50] sm:$0xff] %v841_v6  ;;  %v844_v14 = vadd.f32 %v1093_v12, %v990_v2  ;;  %v835_v16 = vpop.f32.mrb[3].mxu1  ;;  %863 = vst [vmem:[%s1383_s7] sm:$0xff] %v801_v9  ;;  %v804_v17 = vadd.f32 %v990_v2, %v803_v15 }
 0x21a   : > { %871 = vst [vmem:[%s1383_s7 + $0x40] sm:$0xff] %v833_v10  ;;  %v836_v18 = vadd.f32 %v990_v2, %v835_v16  ;;  %866 = vst [vmem:[%s1383_s7 + $0x18] sm:$0xff] %v812_v13 }
 0x21b   : > { %874 = vst [vmem:[%s1383_s7 + $0x58] sm:$0xff] %v844_v14  ;;  %864 = vst [vmem:[%s1383_s7 + $0x8] sm:$0xff] %v804_v17 }
 0x21c   : > { %872 = vst [vmem:[%s1383_s7 + $0x48] sm:$0xff] %v836_v18 }
 0x21d   : > { %v1088_v19 = vpop.f32.mrb[4].mxu0 }
 0x21e   : > { %v1096_v20 = vpop.f32.mrb[4].mxu1  ;;  %v825_v21 = vadd.f32 %v1088_v19, %v990_v2  ;;  %v816_v23 = vpop.f32.mrb[5].mxu0 }
 0x21f   : > { %v857_v22 = vadd.f32 %v1096_v20, %v990_v2  ;;  %v848_v24 = vpop.f32.mrb[5].mxu1  ;;  %v817_v25 = vadd.f32 %v990_v2, %v816_v23  ;;  %v1089_v27 = vpop.f32.mrb[6].mxu0 }
 0x220   : > { %v849_v26 = vadd.f32 %v990_v2, %v848_v24  ;;  %v1097_v28 = vpop.f32.mrb[6].mxu1  ;;  %869 = vst [vmem:[%s1383_s7 + $0x30] sm:$0xff] %v825_v21  ;;  %v828_v29 = vadd.f32 %v1089_v27, %v990_v2  ;;  %v819_v31 = vpop.f32.mrb[7].mxu0 }
 0x221   : > { %877 = vst [vmem:[%s1383_s7 + $0x70] sm:$0xff] %v857_v22  ;;  %v860_v30 = vadd.f32 %v1097_v28, %v990_v2  ;;  %v851_v32 = vpop.f32.mrb[7].mxu1  ;;  %867 = vst [vmem:[%s1383_s7 + $0x20] sm:$0xff] %v817_v25  ;;  %v820_v33 = vadd.f32 %v990_v2, %v819_v31 }
 0x222   : > { %875 = vst [vmem:[%s1383_s7 + $0x60] sm:$0xff] %v849_v26  ;;  %v852_v34 = vadd.f32 %v990_v2, %v851_v32  ;;  %870 = vst [vmem:[%s1383_s7 + $0x38] sm:$0xff] %v828_v29 }
 0x223   : > { %878 = vst [vmem:[%s1383_s7 + $0x78] sm:$0xff] %v860_v30  ;;  %868 = vst [vmem:[%s1383_s7 + $0x28] sm:$0xff] %v820_v33 }
 0x224   : > { %876 = vst [vmem:[%s1383_s7 + $0x68] sm:$0xff] %v852_v34 }
 0x225 PF: > { %s15_s24 = sadd.s32 1, %s1265_s24   ;;  %s1502_s18 = smov %s1245_s19 }
 0x226   : > { %p12_p13 = scmp.ge.s32.totalorder %s15_s24, 6   ;;  %s1503_s19 = smov %s1349_s6 }
 0x227   : > { %s1504_s20 = smov %s1257_s22  ;;  %s1505_s21 = smov %s1261_s23 }
 0x228   : > { %s1506_s22 = smov %s1509_s25  ;;  %s1507_s23 = smov %s1513_s26 }
 0x229   :  { %14 = sbr.rel (!%p12_p13) target bundleno = 4 (0x4), region = 125 }

</bundles_post_ra>
